<compile_context>
chip_gen: v7x
topology: tpu7x:2x2x1
jax: 0.10.0
libtpu: 0.0.40
codegen_flags: <defaults>
</compile_context>

<pallas_src>
import functools
import math

import jax
import jax.numpy as jnp
from jax.experimental import pallas as pl
from jax.experimental.pallas import tpu as pltpu

_NEG_BIG = -1e30  # finite "minus infinity" (avoids exp(-inf - -inf) NaN)


def _round_up(x, m):
    return (x + m - 1) // m * m


def _vmem_limit_bytes():
    """Per-generation scoped-VMEM cap (leave ~25% headroom for the compiler)."""
    try:
        cap = getattr(pltpu.get_tpu_info(), "vmem_capacity_bytes", None)
        if cap:
            return int(cap) * 3 // 4          # ~48 MiB v7x, ~96 MiB v5e/v6e
    except Exception:
        pass
    return 48 * 1024 * 1024                   # safe default on every gen


# ------------------------------------------------------------- kernel A ----
def _qkv_proj_kernel(x_ref, w_ref, b_ref, qkv_ref, *, dp):
    """qkv[s] = x @ W_qkv + b_qkv; scale already folded into the Q columns."""
    acc = jnp.dot(x_ref[...], w_ref[...], preferred_element_type=jnp.float32)
    acc = acc + b_ref[...]
    # Three lane-dense (block_q, Dp) slab stores into the (3, Sp, Dp) layout.
    qkv_ref[0] = acc[:, :dp].astype(qkv_ref.dtype)
    qkv_ref[1] = acc[:, dp:2 * dp].astype(qkv_ref.dtype)
    qkv_ref[2] = acc[:, 2 * dp:].astype(qkv_ref.dtype)


# ------------------------------------------------------------- kernel B ----
def _flash_attn_out_kernel(q_ref, k_ref, v_ref, wo_ref, bo_ref, bias_ref,
                           o_ref, m_sc, l_sc, acc_sc,
                           *, block_k, kv_resident, mask_needed):
    j = pl.program_id(1)

    @pl.when(j == 0)
    def _init():
        m_sc[...] = jnp.full(m_sc.shape, _NEG_BIG, jnp.float32)
        l_sc[...] = jnp.zeros(l_sc.shape, jnp.float32)
        acc_sc[...] = jnp.zeros(acc_sc.shape, jnp.float32)

    if kv_resident:
        # K/V are resident (full Sp) in VMEM; slice the current kv chunk.
        off = pl.multiple_of(j * block_k, block_k)
        k = k_ref[pl.ds(off, block_k), :]
        v = v_ref[pl.ds(off, block_k), :]
    else:
        k = k_ref[...]
        v = v_ref[...]

    q = q_ref[...]                      # (block_q, Dp) bf16, already scaled
    # scores = q @ k^T, transpose absorbed into the contraction (no XLU copy).
    s = jax.lax.dot_general(q, k, (((1,), (1,)), ((), ())),
                            preferred_element_type=jnp.float32)  # (tq, tk) f32

    if mask_needed:                     # static: only when S was padded
        s = s + bias_ref[...]           # (1, block_k) additive mask, one add

    m_prev = m_sc[...]
    m_new = jnp.maximum(m_prev, jnp.max(s, axis=-1, keepdims=True))
    alpha = jnp.exp(m_prev - m_new)
    p = jnp.exp(s - m_new)
    l_sc[...] = alpha * l_sc[...] + jnp.sum(p, axis=-1, keepdims=True)
    acc_sc[...] = alpha * acc_sc[...] + jnp.dot(
        p.astype(v.dtype), v, preferred_element_type=jnp.float32)
    m_sc[...] = m_new

    @pl.when(j == pl.num_programs(1) - 1)
    def _finalize():
        attn = acc_sc[...] * pl.reciprocal(l_sc[...], approx=True)
        out = jnp.dot(attn.astype(wo_ref.dtype), wo_ref[...],
                      preferred_element_type=jnp.float32) + bo_ref[...]
        o_ref[...] = out.astype(o_ref.dtype)


# -------------------------------------------------------------- wrapper ----
@jax.jit
def self_attention(x, params):
    """x: (seq_len, embed_dim) f32.  params: (in,out) weights / (1,out) biases."""
    S, D = x.shape
    scale = 1.0 / math.sqrt(D)          # matches PyTorch: / embed_dim ** 0.5

    Dp = _round_up(D, 128)
    # block_q=128 for short sequences keeps >=2 query programs sooner (v7x has
    # 2 TensorCores sharded over the "parallel" axis); 256 fills the MXU for
    # long sequences.  TODO(synk): S <= 128 still leaves one v7x core idle.
    block_q = 256 if S > 512 else 128
    Sp = _round_up(S, block_q)
    block_k = next(b for b in (512, 256, 128) if Sp % b == 0)
    nq, nk = Sp // block_q, Sp // block_k

    vmem_limit = _vmem_limit_bytes()
    # K + V resident in VMEM (bf16, double-buffered) if it uses <= half budget.
    kv_resident = (8 * Sp * Dp) <= (vmem_limit // 2)
    mask_needed = Sp != S

    # ---- wrapper-side padding / packing (layout plumbing only) ----
    x_p = jnp.pad(x, ((0, Sp - S), (0, Dp - D))).astype(jnp.bfloat16)
    pad_w = lambda w: jnp.pad(w, ((0, Dp - D), (0, Dp - D)))
    pad_b = lambda b: jnp.pad(b, ((0, 0), (0, Dp - D)))
    # Fold 1/sqrt(D) into the Q projection (weights AND bias).
    w_qkv = jnp.concatenate(
        [pad_w(params["wq"] * scale), pad_w(params["wk"]), pad_w(params["wv"])],
        axis=1).astype(jnp.bfloat16)                    # (Dp, 3Dp)
    b_qkv = jnp.concatenate(
        [pad_b(params["bq"] * scale), pad_b(params["bk"]), pad_b(params["bv"])],
        axis=1).astype(jnp.float32)                     # (1, 3Dp)
    wo = pad_w(params["wo"]).astype(jnp.bfloat16)       # (Dp, Dp)
    bo = pad_b(params["bo"]).astype(jnp.float32)        # (1, Dp)
    col = jax.lax.broadcasted_iota(jnp.int32, (1, Sp), 1)
    mask_bias = jnp.where(col < S, 0.0, _NEG_BIG).astype(jnp.float32)  # (1, Sp)

    # ---- kernel A: fused QKV projection -> (3, Sp, Dp) ----
    qkv = pl.pallas_call(
        functools.partial(_qkv_proj_kernel, dp=Dp),
        out_shape=jax.ShapeDtypeStruct((3, Sp, Dp), jnp.bfloat16),
        grid=(Sp // block_q,),
        in_specs=[
            pl.BlockSpec((block_q, Dp), lambda i: (i, 0)),      # x tile
            pl.BlockSpec((Dp, 3 * Dp), lambda i: (0, 0)),       # W_qkv resident
            pl.BlockSpec((1, 3 * Dp), lambda i: (0, 0)),        # b_qkv resident
        ],
        out_specs=pl.BlockSpec((3, block_q, Dp), lambda i: (0, i, 0)),
        compiler_params=pltpu.CompilerParams(
            dimension_semantics=("parallel",),
            vmem_limit_bytes=vmem_limit),
    )(x_p, w_qkv, b_qkv)

    # ---- kernel B: flash attention + output projection ----
    if kv_resident:
        # Constant index_map -> K/V DMA'd from HBM exactly once, then resident.
        k_spec = pl.BlockSpec((None, Sp, Dp), lambda i, j: (1, 0, 0))
        v_spec = pl.BlockSpec((None, Sp, Dp), lambda i, j: (2, 0, 0))
    else:
        # Streamed per kv tile; contiguous thanks to the (3, Sp, Dp) layout.
        k_spec = pl.BlockSpec((None, block_k, Dp), lambda i, j: (1, j, 0))
        v_spec = pl.BlockSpec((None, block_k, Dp), lambda i, j: (2, j, 0))

    out_p = pl.pallas_call(
        functools.partial(_flash_attn_out_kernel, block_k=block_k,
                          kv_resident=kv_resident, mask_needed=mask_needed),
        out_shape=jax.ShapeDtypeStruct((Sp, Dp), jnp.float32),
        grid=(nq, nk),
        in_specs=[
            pl.BlockSpec((None, block_q, Dp), lambda i, j: (0, i, 0)),  # Q tile
            k_spec,                                                     # K
            v_spec,                                                     # V
            pl.BlockSpec((Dp, Dp), lambda i, j: (0, 0)),                # Wo resident
            pl.BlockSpec((1, Dp), lambda i, j: (0, 0)),                 # bo resident
            pl.BlockSpec((1, block_k), lambda i, j: (0, j)),            # mask bias
        ],
        out_specs=pl.BlockSpec((block_q, Dp), lambda i, j: (i, 0)),
        scratch_shapes=[
            pltpu.VMEM((block_q, 1), jnp.float32),    # running max m
            pltpu.VMEM((block_q, 1), jnp.float32),    # running sum l
            pltpu.VMEM((block_q, Dp), jnp.float32),   # output accumulator
        ],
        compiler_params=pltpu.CompilerParams(
            dimension_semantics=("parallel", "arbitrary"),
            vmem_limit_bytes=vmem_limit),
    )(qkv, qkv, qkv, wo, bo, mask_bias)

    return out_p[:S, :D]


# ----------------------------------------------------------- params/ref ----
def init_params(key, embed_dim):
    """nn.Linear-style init (uniform +/- 1/sqrt(fan_in)); weights stored (in, out)."""
    bound = 1.0 / math.sqrt(embed_dim)
    keys = jax.random.split(key, 8)
    u = lambda k, shape: jax.random.uniform(k, shape, jnp.float32, -bound, bound)
    return {
        "wq": u(keys[0], (embed_dim, embed_dim)), "bq": u(keys[1], (1, embed_dim)),
        "wk": u(keys[2], (embed_dim, embed_dim)), "bk": u(keys[3], (1, embed_dim)),
        "wv": u(keys[4], (embed_dim, embed_dim)), "bv": u(keys[5], (1, embed_dim)),
        "wo": u(keys[6], (embed_dim, embed_dim)), "bo": u(keys[7], (1, embed_dim)),
    }


def reference(x, p):
    """Pure-JAX f32 reference matching the PyTorch forward."""
    q = x @ p["wq"] + p["bq"]
    k = x @ p["wk"] + p["bk"]
    v = x @ p["wv"] + p["bv"]
    s = (q @ k.T) / math.sqrt(x.shape[-1])
    w = jax.nn.softmax(s, axis=-1)
    return (w @ v) @ p["wo"] + p["bo"]


if __name__ == "__main__":
    SEQ, EMBED = 8, 32
    key = jax.random.PRNGKey(0)
    kx, kp = jax.random.split(key)
    x = jax.random.normal(kx, (SEQ, EMBED), jnp.float32)
    params = init_params(kp, EMBED)

    out = jax.block_until_ready(self_attention(x, params))
    ref = reference(x, params)

    assert out.shape == (SEQ, EMBED)
    # bf16 matmul operands + approx reciprocal => loosened tolerance vs f32 ref.
    assert jnp.allclose(out, ref, atol=5e-2, rtol=5e-2), "mismatch vs reference"
    print("KERNEL_OK")
</pallas_src>

<mosaic_0001>
module attributes {stable_mosaic.version = 11 : i64} {
  func.func @_qkv_proj_kernel(%arg0: i32, %arg1: memref<128x128xbf16, #tpu.memory_space<vmem>>, %arg2: memref<128x384xbf16, #tpu.memory_space<vmem>>, %arg3: memref<1x384xf32, #tpu.memory_space<vmem>>, %arg4: memref<3x128x128xbf16, #tpu.memory_space<vmem>>) attributes {dimension_semantics = [#tpu.dimension_semantics<parallel>], iteration_bounds = array<i64: 1>, scalar_prefetch = 0 : i64, scratch_operands = 0 : i64, tpu.core_type = #tpu.core_type<tc>, window_params = [{transform_indices = @transform_0, window_bounds = array<i64: 128, 128>}, {pipeline_mode = #tpu.pipeline_mode<synchronous>, transform_indices = @transform_1, window_bounds = array<i64: 128, 384>}, {pipeline_mode = #tpu.pipeline_mode<synchronous>, transform_indices = @transform_2, window_bounds = array<i64: 1, 384>}, {transform_indices = @transform_3, window_bounds = array<i64: 3, 128, 128>}]} {
    %c0 = arith.constant 0 : index
    %c0_0 = arith.constant 0 : index
    %0 = vector.load %arg1[%c0, %c0_0] : memref<128x128xbf16, #tpu.memory_space<vmem>>, vector<128x128xbf16>
    %c0_1 = arith.constant 0 : index
    %c0_2 = arith.constant 0 : index
    %1 = vector.load %arg2[%c0_1, %c0_2] : memref<128x384xbf16, #tpu.memory_space<vmem>>, vector<128x384xbf16>
    %cst = arith.constant dense<0.000000e+00> : vector<128x384xf32>
    %2 = tpu.matmul %0, %1, %cst {dimension_numbers = #tpu.dot_dimension_numbers<[1], [0], [0], [1], [0, 0, 1, 1], [], []>} : vector<128x128xbf16>, vector<128x384xbf16>, vector<128x384xf32> -> vector<128x384xf32>
    %c0_3 = arith.constant 0 : index
    %c0_4 = arith.constant 0 : index
    %3 = vector.load %arg3[%c0_3, %c0_4] : memref<1x384xf32, #tpu.memory_space<vmem>>, vector<1x384xf32>
    %4 = vector.broadcast %3 : vector<1x384xf32> to vector<128x384xf32>
    %5 = arith.addf %2, %4 : vector<128x384xf32>
    %6 = vector.extract_strided_slice %5 {offsets = [0, 0], sizes = [128, 128], strides = [1, 1]} : vector<128x384xf32> to vector<128x128xf32>
    %7 = arith.truncf %6 : vector<128x128xf32> to vector<128x128xbf16>
    %c0_5 = arith.constant 0 : index
    %c0_6 = arith.constant 0 : index
    %c0_7 = arith.constant 0 : index
    %8 = vector.load %arg4[%c0_5, %c0_6, %c0_7] : memref<3x128x128xbf16, #tpu.memory_space<vmem>>, vector<1x128x128xbf16>
    %9 = vector.shape_cast %8 : vector<1x128x128xbf16> to vector<128x128xbf16>
    %10 = vector.shape_cast %7 : vector<128x128xbf16> to vector<1x128x128xbf16>
    tpu.vector_store %arg4[%c0_5, %c0_6, %c0_7], %10 {strides = array<i32>} : memref<3x128x128xbf16, #tpu.memory_space<vmem>>, vector<1x128x128xbf16>,
    %11 = vector.extract_strided_slice %5 {offsets = [0, 128], sizes = [128, 128], strides = [1, 1]} : vector<128x384xf32> to vector<128x128xf32>
    %12 = arith.truncf %11 : vector<128x128xf32> to vector<128x128xbf16>
    %c1 = arith.constant 1 : index
    %c0_8 = arith.constant 0 : index
    %c0_9 = arith.constant 0 : index
    %13 = vector.load %arg4[%c1, %c0_8, %c0_9] : memref<3x128x128xbf16, #tpu.memory_space<vmem>>, vector<1x128x128xbf16>
    %14 = vector.shape_cast %13 : vector<1x128x128xbf16> to vector<128x128xbf16>
    %15 = vector.shape_cast %12 : vector<128x128xbf16> to vector<1x128x128xbf16>
    tpu.vector_store %arg4[%c1, %c0_8, %c0_9], %15 {strides = array<i32>} : memref<3x128x128xbf16, #tpu.memory_space<vmem>>, vector<1x128x128xbf16>,
    %16 = vector.extract_strided_slice %5 {offsets = [0, 256], sizes = [128, 128], strides = [1, 1]} : vector<128x384xf32> to vector<128x128xf32>
    %17 = arith.truncf %16 : vector<128x128xf32> to vector<128x128xbf16>
    %c2 = arith.constant 2 : index
    %c0_10 = arith.constant 0 : index
    %c0_11 = arith.constant 0 : index
    %18 = vector.load %arg4[%c2, %c0_10, %c0_11] : memref<3x128x128xbf16, #tpu.memory_space<vmem>>, vector<1x128x128xbf16>
    %19 = vector.shape_cast %18 : vector<1x128x128xbf16> to vector<128x128xbf16>
    %20 = vector.shape_cast %17 : vector<128x128xbf16> to vector<1x128x128xbf16>
    tpu.vector_store %arg4[%c2, %c0_10, %c0_11], %20 {strides = array<i32>} : memref<3x128x128xbf16, #tpu.memory_space<vmem>>, vector<1x128x128xbf16>,
    return
  }
  func.func @transform_0(%arg0: i32) -> (i32, i32) {
    %c0_i32 = arith.constant 0 : i32
    %c0_i32_0 = arith.constant 0 : i32
    return %arg0, %c0_i32 : i32, i32
  }
  func.func @transform_1(%arg0: i32) -> (i32, i32) {
    %c0_i32 = arith.constant 0 : i32
    %c0_i32_0 = arith.constant 0 : i32
    %c0_i32_1 = arith.constant 0 : i32
    return %c0_i32, %c0_i32_0 : i32, i32
  }
  func.func @transform_2(%arg0: i32) -> (i32, i32) {
    %c0_i32 = arith.constant 0 : i32
    %c0_i32_0 = arith.constant 0 : i32
    %c0_i32_1 = arith.constant 0 : i32
    return %c0_i32, %c0_i32_0 : i32, i32
  }
  func.func @transform_3(%arg0: i32) -> (i32, i32, i32) {
    %c0_i32 = arith.constant 0 : i32
    %c0_i32_0 = arith.constant 0 : i32
    %c0_i32_1 = arith.constant 0 : i32
    return %c0_i32, %arg0, %c0_i32_0 : i32, i32, i32
  }
}

module attributes {stable_mosaic.version = 11 : i64} {
  func.func @_flash_attn_out_kernel(%arg0: i32, %arg1: i32, %arg2: memref<1x128x128xbf16, #tpu.memory_space<vmem>>, %arg3: memref<1x128x128xbf16, #tpu.memory_space<vmem>>, %arg4: memref<1x128x128xbf16, #tpu.memory_space<vmem>>, %arg5: memref<128x128xbf16, #tpu.memory_space<vmem>>, %arg6: memref<1x128xf32, #tpu.memory_space<vmem>>, %arg7: memref<1x128xf32, #tpu.memory_space<vmem>>, %arg8: memref<128x128xf32, #tpu.memory_space<vmem>>, %arg9: memref<128x1xf32, #tpu.memory_space<vmem>>, %arg10: memref<128x1xf32, #tpu.memory_space<vmem>>, %arg11: memref<128x128xf32, #tpu.memory_space<vmem>>) attributes {dimension_semantics = [#tpu.dimension_semantics<parallel>, #tpu.dimension_semantics<arbitrary>], iteration_bounds = array<i64: 1, 1>, scalar_prefetch = 0 : i64, scratch_operands = 3 : i64, tpu.core_type = #tpu.core_type<tc>, window_params = [{transform_indices = @transform_0, window_bounds = array<i64: 1, 128, 128>}, {transform_indices = @transform_1, window_bounds = array<i64: 1, 128, 128>}, {transform_indices = @transform_2, window_bounds = array<i64: 1, 128, 128>}, {pipeline_mode = #tpu.pipeline_mode<synchronous>, transform_indices = @transform_3, window_bounds = array<i64: 128, 128>}, {pipeline_mode = #tpu.pipeline_mode<synchronous>, transform_indices = @transform_4, window_bounds = array<i64: 1, 128>}, {transform_indices = @transform_5, window_bounds = array<i64: 1, 128>}, {transform_indices = @transform_6, window_bounds = array<i64: 128, 128>}]} {
    %c0_i32 = arith.constant 0 : i32
    %0 = arith.cmpi eq, %arg1, %c0_i32 : i32
    %1 = arith.extui %0 : i1 to i32
    %c0_i32_0 = arith.constant 0 : i32
    %2 = arith.cmpi ne, %1, %c0_i32_0 : i32
    scf.if %2 {
      %cst_26 = arith.constant -1.000000e+30 : f32
      %43 = vector.broadcast %cst_26 : f32 to vector<128x1xf32>
      %c0_27 = arith.constant 0 : index
      %c0_28 = arith.constant 0 : index
      %44 = vector.load %arg9[%c0_27, %c0_28] : memref<128x1xf32, #tpu.memory_space<vmem>>, vector<128x1xf32>
      tpu.vector_store %arg9[%c0_27, %c0_28], %43 {strides = array<i32>} : memref<128x1xf32, #tpu.memory_space<vmem>>, vector<128x1xf32>,
      %cst_29 = arith.constant 0.000000e+00 : f32
      %45 = vector.broadcast %cst_29 : f32 to vector<128x1xf32>
      %c0_30 = arith.constant 0 : index
      %c0_31 = arith.constant 0 : index
      %46 = vector.load %arg10[%c0_30, %c0_31] : memref<128x1xf32, #tpu.memory_space<vmem>>, vector<128x1xf32>
      tpu.vector_store %arg10[%c0_30, %c0_31], %45 {strides = array<i32>} : memref<128x1xf32, #tpu.memory_space<vmem>>, vector<128x1xf32>,
      %cst_32 = arith.constant 0.000000e+00 : f32
      %47 = vector.broadcast %cst_32 : f32 to vector<128x128xf32>
      %c0_33 = arith.constant 0 : index
      %c0_34 = arith.constant 0 : index
      %48 = vector.load %arg11[%c0_33, %c0_34] : memref<128x128xf32, #tpu.memory_space<vmem>>, vector<128x128xf32>
      tpu.vector_store %arg11[%c0_33, %c0_34], %47 {strides = array<i32>} : memref<128x128xf32, #tpu.memory_space<vmem>>, vector<128x128xf32>,
    } else {
    }
    %c128_i32 = arith.constant 128 : i32
    %3 = arith.muli %arg1, %c128_i32 : i32
    %4 = tpu.assume_multiple %3, 128 : i32
    %c0 = arith.constant 0 : index
    %5 = arith.index_cast %4 : i32 to index
    %c0_1 = arith.constant 0 : index
    %6 = vector.load %arg3[%c0, %5, %c0_1] : memref<1x128x128xbf16, #tpu.memory_space<vmem>>, vector<1x128x128xbf16>
    %7 = vector.shape_cast %6 : vector<1x128x128xbf16> to vector<128x128xbf16>
    %c0_2 = arith.constant 0 : index
    %8 = arith.index_cast %4 : i32 to index
    %c0_3 = arith.constant 0 : index
    %9 = vector.load %arg4[%c0_2, %8, %c0_3] : memref<1x128x128xbf16, #tpu.memory_space<vmem>>, vector<1x128x128xbf16>
    %10 = vector.shape_cast %9 : vector<1x128x128xbf16> to vector<128x128xbf16>
    %c0_4 = arith.constant 0 : index
    %c0_5 = arith.constant 0 : index
    %c0_6 = arith.constant 0 : index
    %11 = vector.load %arg2[%c0_4, %c0_5, %c0_6] : memref<1x128x128xbf16, #tpu.memory_space<vmem>>, vector<1x128x128xbf16>
    %12 = vector.shape_cast %11 : vector<1x128x128xbf16> to vector<128x128xbf16>
    %cst = arith.constant dense<0.000000e+00> : vector<128x128xf32>
    %13 = tpu.matmul %12, %7, %cst {dimension_numbers = #tpu.dot_dimension_numbers<[1], [1], [0], [0], [0, 0, 1, 0], [], []>} : vector<128x128xbf16>, vector<128x128xbf16>, vector<128x128xf32> -> vector<128x128xf32>
    %c0_7 = arith.constant 0 : index
    %c0_8 = arith.constant 0 : index
    %14 = vector.load %arg7[%c0_7, %c0_8] : memref<1x128xf32, #tpu.memory_space<vmem>>, vector<1x128xf32>
    %15 = vector.broadcast %14 : vector<1x128xf32> to vector<128x128xf32>
    %16 = arith.addf %13, %15 : vector<128x128xf32>
    %c0_9 = arith.constant 0 : index
    %c0_10 = arith.constant 0 : index
    %17 = vector.load %arg9[%c0_9, %c0_10] : memref<128x1xf32, #tpu.memory_space<vmem>>, vector<128x1xf32>
    %cst_11 = arith.constant dense<0xFF800000> : vector<128xf32>
    %18 = vector.multi_reduction <maximumf>, %16, %cst_11 [1] : vector<128x128xf32> to vector<128xf32>
    %19 = vector.shape_cast %18 : vector<128xf32> to vector<128x1xf32>
    %20 = arith.maximumf %17, %19 : vector<128x1xf32>
    %21 = arith.subf %17, %20 : vector<128x1xf32>
    %22 = math.exp %21 : vector<128x1xf32>
    %23 = vector.broadcast %20 : vector<128x1xf32> to vector<128x128xf32>
    %24 = arith.subf %16, %23 : vector<128x128xf32>
    %25 = math.exp %24 : vector<128x128xf32>
    %c0_12 = arith.constant 0 : index
    %c0_13 = arith.constant 0 : index
    %26 = vector.load %arg10[%c0_12, %c0_13] : memref<128x1xf32, #tpu.memory_space<vmem>>, vector<128x1xf32>
    %27 = arith.mulf %22, %26 : vector<128x1xf32>
    %cst_14 = arith.constant dense<0.000000e+00> : vector<128xf32>
    %28 = vector.multi_reduction <add>, %25, %cst_14 [1] : vector<128x128xf32> to vector<128xf32>
    %29 = vector.shape_cast %28 : vector<128xf32> to vector<128x1xf32>
    %30 = arith.addf %27, %29 : vector<128x1xf32>
    %c0_15 = arith.constant 0 : index
    %c0_16 = arith.constant 0 : index
    %31 = vector.load %arg10[%c0_15, %c0_16] : memref<128x1xf32, #tpu.memory_space<vmem>>, vector<128x1xf32>
    tpu.vector_store %arg10[%c0_15, %c0_16], %30 {strides = array<i32>} : memref<128x1xf32, #tpu.memory_space<vmem>>, vector<128x1xf32>,
    %c0_17 = arith.constant 0 : index
    %c0_18 = arith.constant 0 : index
    %32 = vector.load %arg11[%c0_17, %c0_18] : memref<128x128xf32, #tpu.memory_space<vmem>>, vector<128x128xf32>
    %33 = vector.broadcast %22 : vector<128x1xf32> to vector<128x128xf32>
    %34 = arith.mulf %33, %32 : vector<128x128xf32>
    %35 = arith.truncf %25 : vector<128x128xf32> to vector<128x128xbf16>
    %cst_19 = arith.constant dense<0.000000e+00> : vector<128x128xf32>
    %36 = tpu.matmul %35, %10, %cst_19 {dimension_numbers = #tpu.dot_dimension_numbers<[1], [0], [0], [1], [0, 0, 1, 1], [], []>} : vector<128x128xbf16>, vector<128x128xbf16>, vector<128x128xf32> -> vector<128x128xf32>
    %37 = arith.addf %34, %36 : vector<128x128xf32>
    %c0_20 = arith.constant 0 : index
    %c0_21 = arith.constant 0 : index
    %38 = vector.load %arg11[%c0_20, %c0_21] : memref<128x128xf32, #tpu.memory_space<vmem>>, vector<128x128xf32>
    tpu.vector_store %arg11[%c0_20, %c0_21], %37 {strides = array<i32>} : memref<128x128xf32, #tpu.memory_space<vmem>>, vector<128x128xf32>,
    %c0_22 = arith.constant 0 : index
    %c0_23 = arith.constant 0 : index
    %39 = vector.load %arg9[%c0_22, %c0_23] : memref<128x1xf32, #tpu.memory_space<vmem>>, vector<128x1xf32>
    tpu.vector_store %arg9[%c0_22, %c0_23], %20 {strides = array<i32>} : memref<128x1xf32, #tpu.memory_space<vmem>>, vector<128x1xf32>,
    %c0_i32_24 = arith.constant 0 : i32
    %40 = arith.cmpi eq, %arg1, %c0_i32_24 : i32
    %41 = arith.extui %40 : i1 to i32
    %c0_i32_25 = arith.constant 0 : i32
    %42 = arith.cmpi ne, %41, %c0_i32_25 : i32
    scf.if %42 {
      %c0_26 = arith.constant 0 : index
      %c0_27 = arith.constant 0 : index
      %43 = vector.load %arg11[%c0_26, %c0_27] : memref<128x128xf32, #tpu.memory_space<vmem>>, vector<128x128xf32>
      %c0_28 = arith.constant 0 : index
      %c0_29 = arith.constant 0 : index
      %44 = vector.load %arg10[%c0_28, %c0_29] : memref<128x1xf32, #tpu.memory_space<vmem>>, vector<128x1xf32>
      %45 = tpu.reciprocal %44 {approx = true} : vector<128x1xf32> -> vector<128x1xf32>
      %46 = vector.broadcast %45 : vector<128x1xf32> to vector<128x128xf32>
      %47 = arith.mulf %43, %46 : vector<128x128xf32>
      %48 = arith.truncf %47 : vector<128x128xf32> to vector<128x128xbf16>
      %c0_30 = arith.constant 0 : index
      %c0_31 = arith.constant 0 : index
      %49 = vector.load %arg5[%c0_30, %c0_31] : memref<128x128xbf16, #tpu.memory_space<vmem>>, vector<128x128xbf16>
      %cst_32 = arith.constant dense<0.000000e+00> : vector<128x128xf32>
      %50 = tpu.matmul %48, %49, %cst_32 {dimension_numbers = #tpu.dot_dimension_numbers<[1], [0], [0], [1], [0, 0, 1, 1], [], []>} : vector<128x128xbf16>, vector<128x128xbf16>, vector<128x128xf32> -> vector<128x128xf32>
      %c0_33 = arith.constant 0 : index
      %c0_34 = arith.constant 0 : index
      %51 = vector.load %arg6[%c0_33, %c0_34] : memref<1x128xf32, #tpu.memory_space<vmem>>, vector<1x128xf32>
      %52 = vector.broadcast %51 : vector<1x128xf32> to vector<128x128xf32>
      %53 = arith.addf %50, %52 : vector<128x128xf32>
      %c0_35 = arith.constant 0 : index
      %c0_36 = arith.constant 0 : index
      %54 = vector.load %arg8[%c0_35, %c0_36] : memref<128x128xf32, #tpu.memory_space<vmem>>, vector<128x128xf32>
      tpu.vector_store %arg8[%c0_35, %c0_36], %53 {strides = array<i32>} : memref<128x128xf32, #tpu.memory_space<vmem>>, vector<128x128xf32>,
    } else {
    }
    return
  }
  func.func @transform_0(%arg0: i32, %arg1: i32) -> (i32, i32, i32) {
    %c0_i32 = arith.constant 0 : i32
    %c0_i32_0 = arith.constant 0 : i32
    %c0_i32_1 = arith.constant 0 : i32
    return %c0_i32, %arg0, %c0_i32_0 : i32, i32, i32
  }
  func.func @transform_1(%arg0: i32, %arg1: i32) -> (i32, i32, i32) {
    %c1_i32 = arith.constant 1 : i32
    %c0_i32 = arith.constant 0 : i32
    %c0_i32_0 = arith.constant 0 : i32
    %c0_i32_1 = arith.constant 0 : i32
    return %c1_i32, %c0_i32, %c0_i32_0 : i32, i32, i32
  }
  func.func @transform_2(%arg0: i32, %arg1: i32) -> (i32, i32, i32) {
    %c2_i32 = arith.constant 2 : i32
    %c0_i32 = arith.constant 0 : i32
    %c0_i32_0 = arith.constant 0 : i32
    %c0_i32_1 = arith.constant 0 : i32
    return %c2_i32, %c0_i32, %c0_i32_0 : i32, i32, i32
  }
  func.func @transform_3(%arg0: i32, %arg1: i32) -> (i32, i32) {
    %c0_i32 = arith.constant 0 : i32
    %c0_i32_0 = arith.constant 0 : i32
    %c0_i32_1 = arith.constant 0 : i32
    return %c0_i32, %c0_i32_0 : i32, i32
  }
  func.func @transform_4(%arg0: i32, %arg1: i32) -> (i32, i32) {
    %c0_i32 = arith.constant 0 : i32
    %c0_i32_0 = arith.constant 0 : i32
    %c0_i32_1 = arith.constant 0 : i32
    return %c0_i32, %c0_i32_0 : i32, i32
  }
  func.func @transform_5(%arg0: i32, %arg1: i32) -> (i32, i32) {
    %c0_i32 = arith.constant 0 : i32
    %c0_i32_0 = arith.constant 0 : i32
    return %c0_i32, %arg1 : i32, i32
  }
  func.func @transform_6(%arg0: i32, %arg1: i32) -> (i32, i32) {
    %c0_i32 = arith.constant 0 : i32
    %c0_i32_0 = arith.constant 0 : i32
    return %arg0, %c0_i32 : i32, i32
  }
}

</mosaic_0001>

<bundles_post_ra>
// kernel: self_attention.2
= control target key start
LH: loop header
LB: loop body
LE: loop exit
PB: predicated region body
PF: predicated region fallthrough
CT: control target
= control target key end

     0   :  { %v1104_v1 = vmov 0   ;;  %v65_v33 = vlaneseq  ;;  %s1358_s1 = inlined_call_operand.vmem [shape: bf16[128,384], index: 1, kind: input, shape index: {}]   ;;  %s1359_s0 = inlined_call_operand.vmem [shape: bf16[128,128], index: 0, kind: input, shape index: {}]   ;;  %s1360_s2 = inlined_call_operand.vmem [shape: f32[1,384], index: 2, kind: input, shape index: {}]   ;;  %s1361_s3 = inlined_call_operand.vmem [shape: bf16[3,128,128], index: 3, kind: output, shape index: {}]  }
   0x1   :  { %v1064_v0 = vld [vmem:[%s1358_s1 + $0x4] ss:$12 sps:$4 sm:$0xff]   ;;  %288 = vmatprep.mubr.bf16.mxu0 %v1104_v1  ;;  %v1066_v2 = vld [vmem:[%s1358_s1] ss:$12 sps:$4 sm:$0xff]   ;;  %v1067_v3 = vld [vmem:[%s1358_s1 + $0x1c] ss:$12 sps:$4 sm:$0xff]  }
   0x2   :  { %256 = vmatprep.subr.bf16.mxu0 %v1064_v0  ;;  %v1069_v4 = vld [vmem:[%s1358_s1 + $0x18] ss:$12 sps:$4 sm:$0xff]   ;;  %v1070_v5 = vld [vmem:[%s1358_s1 + $0x34] ss:$12 sps:$4 sm:$0xff]   ;;  %v1072_v6 = vld [vmem:[%s1358_s1 + $0x30] ss:$12 sps:$4 sm:$0xff]  }
   0x3   :  { %257 = vmatpush1.bf16.msra.mxu0 %v1066_v2  ;;  %v1073_v7 = vld [vmem:[%s1358_s1 + $0x4c] ss:$12 sps:$4 sm:$0xff]   ;;  %v1075_v8 = vld [vmem:[%s1358_s1 + $0x48] ss:$12 sps:$4 sm:$0xff]   ;;  %v1076_v9 = vld [vmem:[%s1358_s1 + $0x64] ss:$12 sps:$4 sm:$0xff]  }
   0x4   :  { %258 = vmatprep.subr.bf16.mxu0 %v1067_v3  ;;  %v1088_v10 = vld [vmem:[%s1358_s1 + $0x8] ss:$12 sps:$4 sm:$0xff]   ;;  %v1089_v11 = vld [vmem:[%s1359_s0] sm:$0xff]   ;;  %v1093_v17 = vld [vmem:[%s1358_s1 + $0x50] ss:$12 sps:$4 sm:$0xff]   ;;  %v66_v34 = vshrl.u32 %v65_v33, 7 }
   0x5   :  { %1031 = vmatprep.subr.bf16.mxu1 %v1088_v10  ;;  %v1090_v12 = vld [vmem:[%s1358_s1 + $0x20] ss:$12 sps:$4 sm:$0xff]   ;;  %1047 = vmatprep.mubr.bf16.mxu1 %v1089_v11  ;;  %v1091_v14 = vld [vmem:[%s1358_s1 + $0x38] ss:$12 sps:$4 sm:$0xff]   ;;  %v1079_v15 = vld [vmem:[%s1358_s1 + $0x7c] ss:$12 sps:$4 sm:$0xff]  }
   0x6   :  { %v1078_v13 = vld [vmem:[%s1358_s1 + $0x60] ss:$12 sps:$4 sm:$0xff]   ;;  %1032 = vmatpush3.bf16.msra.mxu1 %v1088_v10  ;;  %v1081_v16 = vld [vmem:[%s1358_s1 + $0x78] ss:$12 sps:$4 sm:$0xff]   ;;  %v1084_v19 = vld [vmem:[%s1358_s1 + $0x90] ss:$12 sps:$4 sm:$0xff]  }
   0x7   :  { %259 = vmatpush1.bf16.msra.mxu0 %v1069_v4  ;;  %1033 = vmatprep.subr.bf16.mxu1 %v1090_v12  ;;  %v1082_v18 = vld [vmem:[%s1358_s1 + $0x94] ss:$12 sps:$4 sm:$0xff]   ;;  %v1085_v21 = vld [vmem:[%s1358_s1 + $0xac] ss:$12 sps:$4 sm:$0xff]   ;;  %v1099_v25 = vld [vmem:[%s1358_s1 + $0xb0] ss:$12 sps:$4 sm:$0xff]  }
   0x8   :  { %260 = vmatprep.subr.bf16.mxu0 %v1070_v5  ;;  %v1094_v20 = vld [vmem:[%s1358_s1 + $0x68] ss:$12 sps:$4 sm:$0xff]   ;;  %v1096_v23 = vld [vmem:[%s1358_s1 + $0x80] ss:$12 sps:$4 sm:$0xff]   ;;  %v1097_v24 = vld [vmem:[%s1358_s1 + $0x98] ss:$12 sps:$4 sm:$0xff]  }
   0x9   :  { %v1087_v22 = vld [vmem:[%s1358_s1 + $0xa8] ss:$12 sps:$4 sm:$0xff]   ;;  %v1098_v28 = vld [vmem:[%s1359_s0 + $0x18] sm:$0xff]   ;;  %v1100_v29 = vld [vmem:[%s1359_s0 + $0x20] sm:$0xff]   ;;  %v67_v35 = vsub.s32 0, %v66_v34  ;;  %v71_v37 = vsub.s32 1, %v66_v34 }
   0xa   :  { %1034 = vmatpush3.bf16.msra.mxu1 %v1090_v12  ;;  %v1092_v26 = vld [vmem:[%s1359_s0 + $0x8] sm:$0xff]   ;;  %v1095_v27 = vld [vmem:[%s1359_s0 + $0x10] sm:$0xff]   ;;  %v1103_v32 = vld [vmem:[%s1359_s0 + $0x38] sm:$0xff]   ;;  %v75_v48 = vsub.s32 2, %v66_v34 }
   0xb   :  { %261 = vmatpush1.bf16.msra.mxu0 %v1072_v6  ;;  %1035 = vmatprep.subr.bf16.mxu1 %v1091_v14  ;;  %v1101_v30 = vld [vmem:[%s1359_s0 + $0x28] sm:$0xff]   ;;  %v1102_v31 = vld [vmem:[%s1359_s0 + $0x30] sm:$0xff]   ;;  %v63_v36 = vld [vmem:[%s1360_s2] sm:$0x7] }
   0xc   :  { %262 = vmatprep.subr.bf16.mxu0 %v1073_v7  ;;  %v1232_v38 = vrot.slane %v63_v36, %v67_v35  ;;  %v1234_v40 = vrot.slane %v63_v36, %v71_v37  ;;  %v1246_v52 = vrot.slane %v63_v36, %v75_v48 }
   0xe   :  { %1036 = vmatpush3.bf16.msra.mxu1 %v1091_v14 }
   0xf   :  { %263 = vmatpush1.bf16.msra.mxu0 %v1075_v8  ;;  %1037 = vmatprep.subr.bf16.mxu1 %v1093_v17 }
  0x10   :  { %264 = vmatprep.subr.bf16.mxu0 %v1076_v9 }
  0x12   :  { %1038 = vmatpush3.bf16.msra.mxu1 %v1093_v17 }
  0x13   :  { %265 = vmatpush1.bf16.msra.mxu0 %v1078_v13  ;;  %1039 = vmatprep.subr.bf16.mxu1 %v1094_v20 }
  0x14   :  { %266 = vmatprep.subr.bf16.mxu0 %v1079_v15 }
  0x16   :  { %1040 = vmatpush3.bf16.msra.mxu1 %v1094_v20 }
  0x17   :  { %267 = vmatpush1.bf16.msra.mxu0 %v1081_v16  ;;  %1041 = vmatprep.subr.bf16.mxu1 %v1096_v23 }
  0x18   :  { %268 = vmatprep.subr.bf16.mxu0 %v1082_v18 }
  0x1a   :  { %1042 = vmatpush3.bf16.msra.mxu1 %v1096_v23 }
  0x1b   :  { %269 = vmatpush1.bf16.msra.mxu0 %v1084_v19  ;;  %1043 = vmatprep.subr.bf16.mxu1 %v1097_v24 }
  0x1c   :  { %270 = vmatprep.subr.bf16.mxu0 %v1085_v21 }
  0x1e   :  { %1044 = vmatpush3.bf16.msra.mxu1 %v1097_v24 }
  0x1f   :  { %271 = vmatpush1.bf16.msra.mxu0 %v1087_v22  ;;  %1045 = vmatprep.subr.bf16.mxu1 %v1099_v25 }
  0x22   :  { %289 = vmatmul.mubr.bf16.vlgmr.msra.gmra.mrb[0].mxu0 %v1089_v11  ;;  %1046 = vmatpush3.bf16.msra.mxu1 %v1099_v25 }
  0x23   :  { %298 = vmatprep.mubr.bf16.mxu0 %v1104_v1 }
  0x25   :  { %1048 = vmatmul.mubr.bf16.vlgmr.msra.gmra.mrb[0].mxu1 %v1092_v26 }
  0x26   :  { %1051 = vmatprep.mubr.bf16.mxu1 %v1095_v27 }
  0x2a   :  { %299 = vmatmul.mubr.bf16.gmra.mrb[4].mxu0 %v1092_v26 }
  0x2b   :  { %308 = vmatprep.mubr.bf16.mxu0 %v1104_v1 }
  0x2d   :  { %1052 = vmatmul.mubr.bf16.gmra.mrb[4].mxu1 %v1098_v28 }
  0x2e   :  { %1055 = vmatprep.mubr.bf16.mxu1 %v1100_v29 }
  0x32   :  { %309 = vmatmul.mubr.bf16.gmra.mrb[8].mxu0 %v1095_v27 }
  0x33   :  { %318 = vmatprep.mubr.bf16.mxu0 %v1104_v1 }
  0x35   :  { %1056 = vmatmul.mubr.bf16.gmra.mrb[8].mxu1 %v1101_v30 }
  0x36   :  { %1059 = vmatprep.mubr.bf16.mxu1 %v1102_v31 }
  0x3a   :  { %319 = vmatmul.mubr.bf16.gmra.mrb[12].mxu0 %v1098_v28 }
  0x3b   :  { %328 = vmatprep.mubr.bf16.mxu0 %v1104_v1 }
  0x3d   :  { %1060 = vmatmul.mubr.bf16.gmra.mrb[12].mxu1 %v1103_v32 }
  0x42   :  { %329 = vmatmul.mubr.bf16.gmra.mrb[16].mxu0 %v1100_v29 }
  0x43   :  { %338 = vmatprep.mubr.bf16.mxu0 %v1104_v1 }
  0x4a   :  { %339 = vmatmul.mubr.bf16.gmra.mrb[20].mxu0 %v1101_v30 }
  0x4b   :  { %348 = vmatprep.mubr.bf16.mxu0 %v1104_v1 }
  0x52   :  { %349 = vmatmul.mubr.bf16.gmra.mrb[24].mxu0 %v1102_v31 }
  0x53   :  { %358 = vmatprep.mubr.bf16.mxu0 %v1104_v1 }
  0x5a   :  { %359 = vmatmul.mubr.bf16.gmra.mrb[28].mxu0 %v1103_v32 }
  0xf5   :  { %v290_v39 = vpop.f32.mrb[0].mxu0 }
  0xf6   :  { %v292_v41 = vpop.f32.mrb[1].mxu0  ;;  %v291_v43 = vadd.f32 %v290_v39, %v1232_v38 }
  0xf7   :  { %v294_v42 = vpop.f32.mrb[2].mxu0  ;;  %v293_v46 = vadd.f32 %v292_v41, %v1234_v40 }
  0xf8   :  { %v295_v44 = vadd.f32 %v294_v42, %v1232_v38  ;;  %v296_v45 = vpop.f32.mrb[3].mxu0  ;;  %v1049_v58 = vpop.f32.mrb[0].mxu1 }
  0xf9   :  { %v297_v47 = vadd.f32 %v296_v45, %v1234_v40  ;;  %v412_v61 = vadd.f32 %v1049_v58, %v1246_v52  ;;  %v403_v62 = vpop.f32.mrb[1].mxu1 }
  0xfa   :  { %v875_v49 = vpack.c.bf16 %v295_v44, %v291_v43  ;;  %v404_v0 = vadd.f32 %v403_v62, %v1246_v52  ;;  %v1050_v1 = vpop.f32.mrb[2].mxu1 }
  0xfb   :  { %v915_v50 = vpack.c.bf16 %v297_v47, %v293_v46  ;;  %v415_v3 = vadd.f32 %v1050_v1, %v1246_v52  ;;  %v406_v4 = vpop.f32.mrb[3].mxu1 }
  0xfc   :  { %876 = vst [vmem:[%s1361_s3] sm:$0xff] %v875_v49   ;;  %v407_v5 = vadd.f32 %v406_v4, %v1246_v52 }
  0xfd   :  { %999 = vst [vmem:[%s1361_s3 + $0x40] sm:$0xff] %v915_v50   ;;  %v300_v51 = vpop.f32.mrb[4].mxu0  ;;  %v960_v7 = vpack.c.bf16 %v415_v3, %v412_v61 }
  0xfe   :  { %v302_v53 = vpop.f32.mrb[5].mxu0  ;;  %v301_v55 = vadd.f32 %v300_v51, %v1232_v38  ;;  %v955_v9 = vpack.c.bf16 %v407_v5, %v404_v0 }
  0xff   :  { %v304_v54 = vpop.f32.mrb[6].mxu0  ;;  %v303_v59 = vadd.f32 %v302_v53, %v1234_v40  ;;  %1008 = vst [vmem:[%s1361_s3 + $0x88] sm:$0xff] %v960_v7  }
 0x100   :  { %v305_v56 = vadd.f32 %v304_v54, %v1232_v38  ;;  %v306_v57 = vpop.f32.mrb[7].mxu0  ;;  %1007 = vst [vmem:[%s1361_s3 + $0x80] sm:$0xff] %v955_v9   ;;  %v1053_v14 = vpop.f32.mrb[4].mxu1 }
 0x101   :  { %v307_v60 = vadd.f32 %v306_v57, %v1234_v40  ;;  %v428_v17 = vadd.f32 %v1053_v14, %v1246_v52  ;;  %v419_v18 = vpop.f32.mrb[5].mxu1 }
 0x102   :  { %v880_v63 = vpack.c.bf16 %v305_v56, %v301_v55  ;;  %v420_v20 = vadd.f32 %v419_v18, %v1246_v52  ;;  %v1054_v21 = vpop.f32.mrb[6].mxu1 }
 0x103   :  { %v920_v2 = vpack.c.bf16 %v307_v60, %v303_v59  ;;  %v431_v23 = vadd.f32 %v1054_v21, %v1246_v52  ;;  %v422_v24 = vpop.f32.mrb[7].mxu1 }
 0x104   :  { %992 = vst [vmem:[%s1361_s3 + $0x8] sm:$0xff] %v880_v63   ;;  %v423_v25 = vadd.f32 %v422_v24, %v1246_v52 }
 0x105   :  { %1000 = vst [vmem:[%s1361_s3 + $0x48] sm:$0xff] %v920_v2   ;;  %v310_v6 = vpop.f32.mrb[8].mxu0  ;;  %v970_v27 = vpack.c.bf16 %v431_v23, %v428_v17 }
 0x106   :  { %v312_v8 = vpop.f32.mrb[9].mxu0  ;;  %v311_v11 = vadd.f32 %v310_v6, %v1232_v38  ;;  %v965_v29 = vpack.c.bf16 %v423_v25, %v420_v20 }
 0x107   :  { %v314_v10 = vpop.f32.mrb[10].mxu0  ;;  %v313_v15 = vadd.f32 %v312_v8, %v1234_v40  ;;  %1010 = vst [vmem:[%s1361_s3 + $0x98] sm:$0xff] %v970_v27  }
 0x108   :  { %v315_v12 = vadd.f32 %v314_v10, %v1232_v38  ;;  %v316_v13 = vpop.f32.mrb[11].mxu0  ;;  %1009 = vst [vmem:[%s1361_s3 + $0x90] sm:$0xff] %v965_v29   ;;  %v1057_v34 = vpop.f32.mrb[8].mxu1 }
 0x109   :  { %v317_v16 = vadd.f32 %v316_v13, %v1234_v40  ;;  %v444_v37 = vadd.f32 %v1057_v34, %v1246_v52  ;;  %v435_v39 = vpop.f32.mrb[9].mxu1 }
 0x10a   :  { %v885_v19 = vpack.c.bf16 %v315_v12, %v311_v11  ;;  %v436_v42 = vadd.f32 %v435_v39, %v1246_v52  ;;  %v1058_v43 = vpop.f32.mrb[10].mxu1 }
 0x10b   :  { %v925_v22 = vpack.c.bf16 %v317_v16, %v313_v15  ;;  %v447_v45 = vadd.f32 %v1058_v43, %v1246_v52  ;;  %v438_v46 = vpop.f32.mrb[11].mxu1 }
 0x10c   :  { %993 = vst [vmem:[%s1361_s3 + $0x10] sm:$0xff] %v885_v19   ;;  %v439_v47 = vadd.f32 %v438_v46, %v1246_v52 }
 0x10d   :  { %1001 = vst [vmem:[%s1361_s3 + $0x50] sm:$0xff] %v925_v22   ;;  %v320_v26 = vpop.f32.mrb[12].mxu0  ;;  %v980_v49 = vpack.c.bf16 %v447_v45, %v444_v37 }
 0x10e   :  { %v322_v28 = vpop.f32.mrb[13].mxu0  ;;  %v321_v31 = vadd.f32 %v320_v26, %v1232_v38  ;;  %v975_v51 = vpack.c.bf16 %v439_v47, %v436_v42 }
 0x10f   :  { %v324_v30 = vpop.f32.mrb[14].mxu0  ;;  %v323_v35 = vadd.f32 %v322_v28, %v1234_v40  ;;  %1012 = vst [vmem:[%s1361_s3 + $0xa8] sm:$0xff] %v980_v49  }
 0x110   :  { %v325_v32 = vadd.f32 %v324_v30, %v1232_v38  ;;  %v326_v33 = vpop.f32.mrb[15].mxu0  ;;  %1011 = vst [vmem:[%s1361_s3 + $0xa0] sm:$0xff] %v975_v51   ;;  %v1061_v57 = vpop.f32.mrb[12].mxu1 }
 0x111   :  { %v327_v36 = vadd.f32 %v326_v33, %v1234_v40  ;;  %v460_v60 = vadd.f32 %v1061_v57, %v1246_v52  ;;  %v451_v61 = vpop.f32.mrb[13].mxu1 }
 0x112   :  { %v890_v41 = vpack.c.bf16 %v325_v32, %v321_v31  ;;  %v452_v63 = vadd.f32 %v451_v61, %v1246_v52  ;;  %v1062_v0 = vpop.f32.mrb[14].mxu1 }
 0x113   :  { %v930_v44 = vpack.c.bf16 %v327_v36, %v323_v35  ;;  %v463_v2 = vadd.f32 %v1062_v0, %v1246_v52  ;;  %v454_v3 = vpop.f32.mrb[15].mxu1 }
 0x114   :  { %994 = vst [vmem:[%s1361_s3 + $0x18] sm:$0xff] %v890_v41   ;;  %v455_v4 = vadd.f32 %v454_v3, %v1246_v52 }
 0x115   :  { %1002 = vst [vmem:[%s1361_s3 + $0x58] sm:$0xff] %v930_v44   ;;  %v330_v48 = vpop.f32.mrb[16].mxu0  ;;  %v990_v6 = vpack.c.bf16 %v463_v2, %v460_v60 }
 0x116   :  { %v332_v50 = vpop.f32.mrb[17].mxu0  ;;  %v331_v54 = vadd.f32 %v330_v48, %v1232_v38  ;;  %v985_v8 = vpack.c.bf16 %v455_v4, %v452_v63 }
 0x117   :  { %v334_v53 = vpop.f32.mrb[18].mxu0  ;;  %v333_v58 = vadd.f32 %v332_v50, %v1234_v40  ;;  %1014 = vst [vmem:[%s1361_s3 + $0xb8] sm:$0xff] %v990_v6  }
 0x118   :  { %v335_v55 = vadd.f32 %v334_v53, %v1232_v38  ;;  %v336_v56 = vpop.f32.mrb[19].mxu0  ;;  %1013 = vst [vmem:[%s1361_s3 + $0xb0] sm:$0xff] %v985_v8  }
 0x119   :  { %v337_v59 = vadd.f32 %v336_v56, %v1234_v40 }
 0x11a   :  { %v895_v62 = vpack.c.bf16 %v335_v55, %v331_v54 }
 0x11b   :  { %v935_v1 = vpack.c.bf16 %v337_v59, %v333_v58 }
 0x11c   :  { %995 = vst [vmem:[%s1361_s3 + $0x20] sm:$0xff] %v895_v62  }
 0x11d   :  { %1003 = vst [vmem:[%s1361_s3 + $0x60] sm:$0xff] %v935_v1   ;;  %v340_v5 = vpop.f32.mrb[20].mxu0 }
 0x11e   :  { %v342_v7 = vpop.f32.mrb[21].mxu0  ;;  %v341_v10 = vadd.f32 %v340_v5, %v1232_v38 }
 0x11f   :  { %v344_v9 = vpop.f32.mrb[22].mxu0  ;;  %v343_v52 = vadd.f32 %v342_v7, %v1234_v40 }
 0x120   :  { %v345_v11 = vadd.f32 %v344_v9, %v1232_v38  ;;  %v346_v12 = vpop.f32.mrb[23].mxu0 }
 0x121   :  { %v347_v13 = vadd.f32 %v346_v12, %v1234_v40 }
 0x122   :  { %v900_v14 = vpack.c.bf16 %v345_v11, %v341_v10 }
 0x123   :  { %v940_v15 = vpack.c.bf16 %v347_v13, %v343_v52 }
 0x124   :  { %996 = vst [vmem:[%s1361_s3 + $0x28] sm:$0xff] %v900_v14  }
 0x125   :  { %1004 = vst [vmem:[%s1361_s3 + $0x68] sm:$0xff] %v940_v15   ;;  %v350_v16 = vpop.f32.mrb[24].mxu0 }
 0x126   :  { %v352_v17 = vpop.f32.mrb[25].mxu0  ;;  %v351_v19 = vadd.f32 %v350_v16, %v1232_v38 }
 0x127   :  { %v354_v18 = vpop.f32.mrb[26].mxu0  ;;  %v353_v22 = vadd.f32 %v352_v17, %v1234_v40 }
 0x128   :  { %v355_v20 = vadd.f32 %v354_v18, %v1232_v38  ;;  %v356_v21 = vpop.f32.mrb[27].mxu0 }
 0x129   :  { %v357_v23 = vadd.f32 %v356_v21, %v1234_v40 }
 0x12a   :  { %v905_v24 = vpack.c.bf16 %v355_v20, %v351_v19 }
 0x12b   :  { %v945_v25 = vpack.c.bf16 %v357_v23, %v353_v22 }
 0x12c   :  { %997 = vst [vmem:[%s1361_s3 + $0x30] sm:$0xff] %v905_v24  }
 0x12d   :  { %1005 = vst [vmem:[%s1361_s3 + $0x70] sm:$0xff] %v945_v25   ;;  %v360_v26 = vpop.f32.mrb[28].mxu0 }
 0x12e   :  { %v362_v27 = vpop.f32.mrb[29].mxu0  ;;  %v361_v29 = vadd.f32 %v360_v26, %v1232_v38 }
 0x12f   :  { %v364_v28 = vpop.f32.mrb[30].mxu0  ;;  %v363_v32 = vadd.f32 %v362_v27, %v1234_v40 }
 0x130   :  { %v365_v30 = vadd.f32 %v364_v28, %v1232_v38  ;;  %v366_v31 = vpop.f32.mrb[31].mxu0 }
 0x131   :  { %v367_v33 = vadd.f32 %v366_v31, %v1234_v40 }
 0x132   :  { %v910_v34 = vpack.c.bf16 %v365_v30, %v361_v29 }
 0x133   :  { %v950_v35 = vpack.c.bf16 %v367_v33, %v363_v32 }
 0x134   :  { %998 = vst [vmem:[%s1361_s3 + $0x38] sm:$0xff] %v910_v34  }
 0x135   :  { %1006 = vst [vmem:[%s1361_s3 + $0x78] sm:$0xff] %v950_v35  }

// kernel: self_attention.3
= control target key start
LH: loop header
LB: loop body
LE: loop exit
PB: predicated region body
PF: predicated region fallthrough
CT: control target
= control target key end

     0   :  { %vm34_vm0 = vcmask 7168   ;;  %v1680_v16 = vmov -1e+30   ;;  %v1681_v38 = vmov 0   ;;  %v1682_v47 = vmov 0.0   ;;  %s2275_s1 = inlined_call_operand.vmem [shape: bf16[3,128,128], index: 1, kind: input, shape index: {}, may-alias: {0,1,2}]   ;;  %s2276_s0 = inlined_call_operand.vmem [shape: bf16[3,128,128], index: 0, kind: input, shape index: {}, may-alias: {0,1,2}]   ;;  %s2277_s5 = inlined_call_operand.vmem [shape: f32[1,128], index: 5, kind: input, shape index: {}]   ;;  %s2278_s2 = inlined_call_operand.vmem [shape: bf16[3,128,128], index: 2, kind: input, shape index: {}, may-alias: {0,1,2}]   ;;  %s2279_s3 = inlined_call_operand.vmem [shape: bf16[128,128], index: 3, kind: input, shape index: {}]   ;;  %s2280_s4 = inlined_call_operand.vmem [shape: f32[1,128], index: 4, kind: input, shape index: {}]   ;;  %s2281_s6 = inlined_call_operand.vmem [shape: f32[128,128], index: 6, kind: output, shape index: {}]  }
   0x1   :  { %v1552_v0 = vld [vmem:[%s2275_s1 + $0x40] sm:$0xff]   ;;  %v1553_v1 = vld [vmem:[%s2275_s1 + $0x48] sm:$0xff]   ;;  %v1554_v2 = vld [vmem:[%s2275_s1 + $0x50] sm:$0xff]   ;;  %37 = vst.msk [vmem:[#allocation2 + $0x10] sm:$0xff] %vm34_vm0, %v1680_v16  ;;  %1551 = vset.pattern.permute.xlu1 %v1681_v38  ;;  %1550 = vset.pattern.permute.xlu0 %v1681_v38 }
   0x2   :  { %1451 = vmatprep.subr.bf16.mxu0 %v1552_v0  ;;  %v1560_v3 = vld [vmem:[%s2276_s0] sm:$0xff]   ;;  %v1555_v4 = vld [vmem:[%s2275_s1 + $0x58] sm:$0xff]   ;;  %v1557_v6 = vld [vmem:[%s2275_s1 + $0x68] sm:$0xff]   ;;  %35 = vst.msk [vmem:[#allocation2] sm:$0xff] %vm34_vm0, %v1680_v16 }
   0x3   :  { %1452 = vmatpush3.bf16.xpose.msra.mxu0 %v1552_v0  ;;  %1467 = vmatprep.mubr.bf16.mxu0 %v1560_v3  ;;  %v1556_v5 = vld [vmem:[%s2275_s1 + $0x60] sm:$0xff]   ;;  %v1558_v7 = vld [vmem:[%s2275_s1 + $0x70] sm:$0xff]   ;;  %v1559_v8 = vld [vmem:[%s2275_s1 + $0x78] sm:$0xff]   ;;  %36 = vst.msk [vmem:[#allocation2 + $0x8] sm:$0xff] %vm34_vm0, %v1680_v16 }
   0x4   :  { %1453 = vmatprep.subr.bf16.mxu0 %v1553_v1  ;;  %v1561_v9 = vld [vmem:[%s2276_s0 + $0x8] sm:$0xff]   ;;  %v1562_v10 = vld [vmem:[%s2276_s0 + $0x10] sm:$0xff]   ;;  %v1563_v11 = vld [vmem:[%s2276_s0 + $0x18] sm:$0xff]   ;;  %38 = vst.msk [vmem:[#allocation2 + $0x18] sm:$0xff] %vm34_vm0, %v1680_v16 }
   0x5   :  { %v1564_v12 = vld [vmem:[%s2276_s0 + $0x20] sm:$0xff]   ;;  %v1565_v13 = vld [vmem:[%s2276_s0 + $0x28] sm:$0xff]   ;;  %v1566_v14 = vld [vmem:[%s2276_s0 + $0x30] sm:$0xff]   ;;  %39 = vst.msk [vmem:[#allocation2 + $0x20] sm:$0xff] %vm34_vm0, %v1680_v16 }
   0x6   :  { %v1567_v15 = vld [vmem:[%s2276_s0 + $0x38] sm:$0xff]   ;;  %40 = vst.msk [vmem:[#allocation2 + $0x28] sm:$0xff] %vm34_vm0, %v1680_v16  ;;  %41 = vst.msk [vmem:[#allocation2 + $0x30] sm:$0xff] %vm34_vm0, %v1680_v16  ;;  %v1785_v17 = vld [vmem:[%s2277_s5] ss:$0 sm:$0xff] }
   0x7   :  { %42 = vst.msk [vmem:[#allocation2 + $0x38] sm:$0xff] %vm34_vm0, %v1680_v16  ;;  %43 = vst.msk [vmem:[#allocation2 + $0x40] sm:$0xff] %vm34_vm0, %v1680_v16  ;;  %v1568_v52 = vld [vmem:[%s2278_s2 + $0x80] sm:$0xff]   ;;  %v1569_v53 = vld [vmem:[%s2278_s2 + $0x88] sm:$0xff]  }
   0x8   :  { %44 = vst.msk [vmem:[#allocation2 + $0x48] sm:$0xff] %vm34_vm0, %v1680_v16  ;;  %45 = vst.msk [vmem:[#allocation2 + $0x50] sm:$0xff] %vm34_vm0, %v1680_v16  ;;  %1483 = vmatprep.subr.bf16.mxu1 %v1568_v52  ;;  %v1873_v54 = vld [vmem:[#allocation2 + $0x10] sm:$0xff] }
   0x9   :  { %46 = vst.msk [vmem:[#allocation2 + $0x58] sm:$0xff] %vm34_vm0, %v1680_v16  ;;  %47 = vst.msk [vmem:[#allocation2 + $0x60] sm:$0xff] %vm34_vm0, %v1680_v16  ;;  %1484 = vmatpush3.bf16.msra.mxu1 %v1568_v52  ;;  %v1875_v55 = vld [vmem:[#allocation2] sm:$0xff]  ;;  %v1570_v63 = vld [vmem:[%s2278_s2 + $0x90] sm:$0xff]  }
   0xa   :  { %48 = vst.msk [vmem:[#allocation2 + $0x68] sm:$0xff] %vm34_vm0, %v1680_v16  ;;  %49 = vst.msk [vmem:[#allocation2 + $0x70] sm:$0xff] %vm34_vm0, %v1680_v16  ;;  %1485 = vmatprep.subr.bf16.mxu1 %v1569_v53  ;;  %v1890_v62 = vld [vmem:[#allocation2 + $0x8] sm:$0xff] }
   0xb   :  { %1454 = vmatpush3.bf16.xpose.msra.mxu0 %v1553_v1  ;;  %50 = vst.msk [vmem:[#allocation2 + $0x78] sm:$0xff] %vm34_vm0, %v1680_v16  ;;  %51 = vst.msk [vmem:[#allocation3] sm:$0xff] %vm34_vm0, %v1682_v47  ;;  %v1883_v60 = vld [vmem:[#allocation2 + $0x18] sm:$0xff] }
   0xc   :  { %1455 = vmatprep.subr.bf16.mxu0 %v1554_v2  ;;  %52 = vst.msk [vmem:[#allocation3 + $0x8] sm:$0xff] %vm34_vm0, %v1682_v47  ;;  %53 = vst.msk [vmem:[#allocation3 + $0x10] sm:$0xff] %vm34_vm0, %v1682_v47 }
   0xd   :  { %54 = vst.msk [vmem:[#allocation3 + $0x18] sm:$0xff] %vm34_vm0, %v1682_v47  ;;  %55 = vst.msk [vmem:[#allocation3 + $0x20] sm:$0xff] %vm34_vm0, %v1682_v47  ;;  %1486 = vmatpush3.bf16.msra.mxu1 %v1569_v53 }
   0xe   :  { %56 = vst.msk [vmem:[#allocation3 + $0x28] sm:$0xff] %vm34_vm0, %v1682_v47  ;;  %57 = vst.msk [vmem:[#allocation3 + $0x30] sm:$0xff] %vm34_vm0, %v1682_v47  ;;  %1487 = vmatprep.subr.bf16.mxu1 %v1570_v63 }
   0xf   :  { %58 = vst.msk [vmem:[#allocation3 + $0x38] sm:$0xff] %vm34_vm0, %v1682_v47  ;;  %59 = vst.msk [vmem:[#allocation3 + $0x40] sm:$0xff] %vm34_vm0, %v1682_v47 }
  0x10   :  { %60 = vst.msk [vmem:[#allocation3 + $0x48] sm:$0xff] %vm34_vm0, %v1682_v47  ;;  %61 = vst.msk [vmem:[#allocation3 + $0x50] sm:$0xff] %vm34_vm0, %v1682_v47 }
  0x11   :  { %62 = vst.msk [vmem:[#allocation3 + $0x58] sm:$0xff] %vm34_vm0, %v1682_v47  ;;  %63 = vst.msk [vmem:[#allocation3 + $0x60] sm:$0xff] %vm34_vm0, %v1682_v47  ;;  %1488 = vmatpush3.bf16.msra.mxu1 %v1570_v63 }
  0x12   :  { %64 = vst.msk [vmem:[#allocation3 + $0x68] sm:$0xff] %vm34_vm0, %v1682_v47  ;;  %65 = vst.msk [vmem:[#allocation3 + $0x70] sm:$0xff] %vm34_vm0, %v1682_v47 }
  0x13   :  { %1456 = vmatpush3.bf16.xpose.msra.mxu0 %v1554_v2  ;;  %66 = vst.msk [vmem:[#allocation3 + $0x78] sm:$0xff] %vm34_vm0, %v1682_v47 }
  0x14   :  { %1457 = vmatprep.subr.bf16.mxu0 %v1555_v4 }
  0x1b   :  { %1458 = vmatpush3.bf16.xpose.msra.mxu0 %v1555_v4 }
  0x1c   :  { %1459 = vmatprep.subr.bf16.mxu0 %v1556_v5 }
  0x23   :  { %1460 = vmatpush3.bf16.xpose.msra.mxu0 %v1556_v5 }
  0x24   :  { %1461 = vmatprep.subr.bf16.mxu0 %v1557_v6 }
  0x2b   :  { %1462 = vmatpush3.bf16.xpose.msra.mxu0 %v1557_v6  ;;  %v1911_v6 = vld [vmem:[#allocation2 + $0x20] sm:$0xff] }
  0x2c   :  { %1463 = vmatprep.subr.bf16.mxu0 %v1558_v7 }
  0x33   :  { %1464 = vmatpush3.bf16.xpose.msra.mxu0 %v1558_v7  ;;  %v1571_v7 = vld [vmem:[%s2278_s2 + $0x98] sm:$0xff]  }
  0x34   :  { %1465 = vmatprep.subr.bf16.mxu0 %v1559_v8  ;;  %1489 = vmatprep.subr.bf16.mxu1 %v1571_v7 }
  0x35   :  { %1490 = vmatpush3.bf16.msra.mxu1 %v1571_v7 }
  0x3b   :  { %1466 = vmatpush3.bf16.xpose.msra.mxu0 %v1559_v8 }
  0x42   :  { %1468 = vmatmul.mubr.bf16.vlgmr.msra.gmra.mrb[0].mxu0 %v1561_v9  ;;  %v1920_v9 = vld [vmem:[#allocation2 + $0x38] sm:$0xff] }
  0x43   :  { %1471 = vmatprep.mubr.bf16.mxu0 %v1562_v10 }
  0x4a   :  { %1472 = vmatmul.mubr.bf16.gmra.mrb[4].mxu0 %v1563_v11 }
  0x4b   :  { %1475 = vmatprep.mubr.bf16.mxu0 %v1564_v12 }
  0x52   :  { %1476 = vmatmul.mubr.bf16.gmra.mrb[8].mxu0 %v1565_v13 }
  0x53   :  { %1479 = vmatprep.mubr.bf16.mxu0 %v1566_v14  ;;  %v1929_v14 = vld [vmem:[#allocation2 + $0x30] sm:$0xff] }
  0x5a   :  { %1480 = vmatmul.mubr.bf16.gmra.mrb[12].mxu0 %v1567_v15  ;;  %v1572_v15 = vld [vmem:[%s2278_s2 + $0xa0] sm:$0xff]  }
  0x5b   :  { %1491 = vmatprep.subr.bf16.mxu1 %v1572_v15 }
  0x5c   :  { %1492 = vmatpush3.bf16.msra.mxu1 %v1572_v15 }
 0x115   :  { %v1469_v18 = vpop.f32.mrb[0].mxu0 }
 0x116   :  { %v1788_v19 = vadd.f32 %v1469_v18, %v1785_v17  ;;  %v275_v20 = vpop.f32.mrb[1].mxu0 }
 0x117   :  { %v1791_v21 = vadd.f32 %v1785_v17, %v275_v20  ;;  %v1470_v22 = vpop.f32.mrb[2].mxu0 }
 0x118   :  { %358 = vmax.xlane.f32.xlu1 %v1788_v19  ;;  %v278_v23 = vpop.f32.mrb[3].mxu0  ;;  %v1796_v24 = vadd.f32 %v1470_v22, %v1785_v17 }
 0x119   :  { %354 = vmax.xlane.f32.xlu0 %v1791_v21  ;;  %v1799_v25 = vadd.f32 %v1785_v17, %v278_v23 }
 0x11c   :  { %360 = vmax.xlane.f32.xlu1 %v1796_v24 }
 0x11d   :  { %v1473_v26 = vpop.f32.mrb[4].mxu0  ;;  %356 = vmax.xlane.f32.xlu0 %v1799_v25 }
 0x11e   :  { %v291_v27 = vpop.f32.mrb[5].mxu0  ;;  %v1812_v32 = vadd.f32 %v1473_v26, %v1785_v17 }
 0x11f   :  { %v1804_v28 = vadd.f32 %v1785_v17, %v291_v27  ;;  %v1474_v29 = vpop.f32.mrb[6].mxu0  ;;  %v1950_v27 = vld [vmem:[#allocation2 + $0x40] sm:$0xff] }
 0x120   :  { %v1807_v30 = vadd.f32 %v1474_v29, %v1785_v17  ;;  %v294_v31 = vpop.f32.mrb[7].mxu0  ;;  %v1573_v29 = vld [vmem:[%s2278_s2 + $0xa8] sm:$0xff]  }
 0x121   :  { %362 = vmax.xlane.f32.xlu0 %v1804_v28  ;;  %v1815_v33 = vadd.f32 %v1785_v17, %v294_v31  ;;  %1493 = vmatprep.subr.bf16.mxu1 %v1573_v29 }
 0x122   :  { %368 = vmax.xlane.f32.xlu1 %v1807_v30  ;;  %1494 = vmatpush3.bf16.msra.mxu1 %v1573_v29 }
 0x125   :  { %v1477_v34 = vpop.f32.mrb[8].mxu0  ;;  %366 = vmax.xlane.f32.xlu0 %v1812_v32 }
 0x126   :  { %v307_v35 = vpop.f32.mrb[9].mxu0  ;;  %364 = vmax.xlane.f32.xlu1 %v1815_v33  ;;  %v1826_v41 = vadd.f32 %v1477_v34, %v1785_v17  ;;  %v1960_v34 = vld [vmem:[#allocation2 + $0x58] sm:$0xff] }
 0x127   :  { %v1820_v36 = vadd.f32 %v1785_v17, %v307_v35  ;;  %v1478_v37 = vpop.f32.mrb[10].mxu0 }
 0x128   :  { %v1823_v39 = vadd.f32 %v1478_v37, %v1785_v17  ;;  %v310_v40 = vpop.f32.mrb[11].mxu0 }
 0x129   :  { %370 = vmax.xlane.f32.xlu0 %v1820_v36  ;;  %v1831_v42 = vadd.f32 %v1785_v17, %v310_v40 }
 0x12a   :  { %376 = vmax.xlane.f32.xlu1 %v1823_v39 }
 0x12d   :  { %v1481_v43 = vpop.f32.mrb[12].mxu0  ;;  %374 = vmax.xlane.f32.xlu0 %v1826_v41 }
 0x12e   :  { %v323_v44 = vpop.f32.mrb[13].mxu0  ;;  %372 = vmax.xlane.f32.xlu1 %v1831_v42  ;;  %v1858_v50 = vadd.f32 %v1481_v43, %v1785_v17 }
 0x12f   :  { %v1836_v45 = vadd.f32 %v1785_v17, %v323_v44  ;;  %v1482_v46 = vpop.f32.mrb[14].mxu0  ;;  %v1972_v44 = vld [vmem:[#allocation2 + $0x50] sm:$0xff] }
 0x130   :  { %v1855_v48 = vadd.f32 %v1482_v46, %v1785_v17  ;;  %v326_v49 = vpop.f32.mrb[15].mxu0  ;;  %v1574_v46 = vld [vmem:[%s2278_s2 + $0xb0] sm:$0xff]  }
 0x131   :  { %378 = vmax.xlane.f32.xlu0 %v1836_v45  ;;  %v1863_v51 = vadd.f32 %v1785_v17, %v326_v49  ;;  %v1938_v17 = vld [vmem:[#allocation2 + $0x28] sm:$0xff]  ;;  %1495 = vmatprep.subr.bf16.mxu1 %v1574_v46 }
 0x132   :  { %384 = vmax.xlane.f32.xlu1 %v1855_v48  ;;  %v1982_v49 = vld [vmem:[#allocation2 + $0x48] sm:$0xff]  ;;  %1496 = vmatpush3.bf16.msra.mxu1 %v1574_v46 }
 0x133   :  { %v2024_v46 = vld [vmem:[#allocation2 + $0x68] sm:$0xff] }
 0x135   :  { %382 = vmax.xlane.f32.xlu0 %v1858_v50 }
 0x136   :  { %380 = vmax.xlane.f32.xlu1 %v1863_v51 }
 0x1a5   :  { %v359_v56 = vpop.xlane.xlu1 %358 }
 0x1a6   :  { %v1878_v57 = vmax.f32 %v1873_v54, %v359_v56  ;;  %v355_v58 = vpop.xlane.xlu0 %354 }
 0x1a7   :  { %v1881_v59 = vmax.f32 %v1875_v55, %v355_v58 }
 0x1a8   :  { %974 = vst.msk [vmem:[#allocation2 + $0x10] sm:$0xff] %vm34_vm0, %v1878_v57  ;;  %462 = vperm.xlu1 %1551, %v1878_v57  }
 0x1a9   :  { %v402_v0 = vsub.f32 %v1875_v55, %v1881_v59  ;;  %972 = vst.msk [vmem:[#allocation2] sm:$0xff] %vm34_vm0, %v1881_v59  ;;  %v361_v1 = vpop.xlane.xlu1 %360  ;;  %452 = vperm.xlu0 %1550, %v1881_v59  }
 0x1aa   :  { %v1901_v2 = vmax.f32 %v1883_v60, %v361_v1  ;;  %v357_v3 = vpop.xlane.xlu0 %356  ;;  %v1994_v1 = vld [vmem:[#allocation2 + $0x60] sm:$0xff] }
 0x1ab   :  { %v1904_v4 = vmax.f32 %v1890_v62, %v357_v3  ;;  %v1575_v3 = vld [vmem:[%s2278_s2 + $0xb8] sm:$0xff]  }
 0x1ac   :  { %975 = vst.msk [vmem:[#allocation2 + $0x18] sm:$0xff] %vm34_vm0, %v1901_v2  ;;  %467 = vperm.xlu1 %1551, %v1901_v2   ;;  %1497 = vmatprep.subr.bf16.mxu1 %v1575_v3 }
 0x1ad   :  { %v403_v8 = vsub.f32 %v1890_v62, %v1904_v4  ;;  %973 = vst.msk [vmem:[#allocation2 + $0x8] sm:$0xff] %vm34_vm0, %v1904_v4  ;;  %1498 = vmatpush3.bf16.msra.mxu1 %v1575_v3 }
 0x1ae   :  { %v363_v10 = vpop.xlane.xlu0 %362 }
 0x1af   :  { %v1923_v11 = vmax.f32 %v1911_v6, %v363_v10  ;;  %v369_v12 = vpop.xlane.xlu1 %368  ;;  %v2004_v10 = vld [vmem:[#allocation2 + $0x78] sm:$0xff] }
 0x1b0   :  { %v1926_v13 = vmax.f32 %v1920_v9, %v369_v12  ;;  %457 = vperm.xlu1 %1551, %v1904_v4  }
 0x1b1   :  { %976 = vst.msk [vmem:[#allocation2 + $0x20] sm:$0xff] %vm34_vm0, %v1923_v11 }
 0x1b2   :  { %979 = vst.msk [vmem:[#allocation2 + $0x38] sm:$0xff] %vm34_vm0, %v1926_v13  ;;  %v367_v20 = vpop.xlane.xlu0 %366 }
 0x1b3   :  { %v1945_v22 = vmax.f32 %v1929_v14, %v367_v20  ;;  %v365_v23 = vpop.xlane.xlu1 %364 }
 0x1b4   :  { %v1948_v26 = vmax.f32 %v1938_v17, %v365_v23 }
 0x1b5   :  { %978 = vst.msk [vmem:[#allocation2 + $0x30] sm:$0xff] %vm34_vm0, %v1945_v22  ;;  %482 = vperm.xlu1 %1551, %v1945_v22  }
 0x1b6   :  { %977 = vst.msk [vmem:[#allocation2 + $0x28] sm:$0xff] %vm34_vm0, %v1948_v26  ;;  %v371_v37 = vpop.xlane.xlu0 %370  ;;  %v2285_v55 = vsub.f32 %v1938_v17, %v1948_v26 }
 0x1b7   :  { %v377_v38 = vpop.xlane.xlu1 %376  ;;  %v1967_v40 = vmax.f32 %v1950_v27, %v371_v37  ;;  %v2017_v37 = vld [vmem:[#allocation2 + $0x70] sm:$0xff] }
 0x1b8   :  { %v1970_v43 = vmax.f32 %v1960_v34, %v377_v38  ;;  %v428_v59 = vmul.f32 1.442695, %v2285_v55 }
 0x1b9   :  { %980 = vst.msk [vmem:[#allocation2 + $0x40] sm:$0xff] %vm34_vm0, %v1967_v40  ;;  %472 = vperm.xlu1 %1551, %v1923_v11  }
 0x1ba   :  { %983 = vst.msk [vmem:[#allocation2 + $0x58] sm:$0xff] %vm34_vm0, %v1970_v43  ;;  %v375_v53 = vpop.xlane.xlu0 %374 }
 0x1bb   :  { %v373_v56 = vpop.xlane.xlu1 %372  ;;  %v1989_v58 = vmax.f32 %v1972_v44, %v375_v53 }
 0x1bc   :  { %v1992_v63 = vmax.f32 %v1982_v49, %v373_v56 }
 0x1bd   :  { %982 = vst.msk [vmem:[#allocation2 + $0x50] sm:$0xff] %vm34_vm0, %v1989_v58  ;;  %477 = vperm.xlu1 %1551, %v1948_v26   ;;  %v2291_v26 = vsub.f32 %v1960_v34, %v1970_v43 }
 0x1be   :  { %981 = vst.msk [vmem:[#allocation2 + $0x48] sm:$0xff] %vm34_vm0, %v1992_v63  ;;  %497 = vperm.xlu0 %1550, %v1992_v63   ;;  %v379_v15 = vpop.xlane.xlu0 %378 }
 0x1bf   :  { %v385_v20 = vpop.xlane.xlu1 %384  ;;  %v2012_v23 = vmax.f32 %v1994_v1, %v379_v15 }
 0x1c0   :  { %v2015_v29 = vmax.f32 %v2004_v10, %v385_v20 }
 0x1c1   :  { %984 = vst.msk [vmem:[#allocation2 + $0x60] sm:$0xff] %vm34_vm0, %v2012_v23  ;;  %487 = vperm.xlu1 %1551, %v1926_v13  }
 0x1c2   :  { %987 = vst.msk [vmem:[#allocation2 + $0x78] sm:$0xff] %vm34_vm0, %v2015_v29  ;;  %507 = vperm.xlu0 %1550, %v1970_v43   ;;  %v383_v56 = vpop.xlane.xlu0 %382  ;;  %v2294_v55 = vsub.f32 %v2004_v10, %v2015_v29 }
 0x1c3   :  { %v381_v3 = vpop.xlane.xlu1 %380  ;;  %v2032_v15 = vmax.f32 %v2017_v37, %v383_v56 }
 0x1c4   :  { %v2035_v20 = vmax.f32 %v2024_v46, %v381_v3 }
 0x1c5   :  { %986 = vst.msk [vmem:[#allocation2 + $0x70] sm:$0xff] %vm34_vm0, %v2032_v15  ;;  %492 = vperm.xlu1 %1551, %v1967_v40  }
 0x1c6   :  { %985 = vst.msk [vmem:[#allocation2 + $0x68] sm:$0xff] %vm34_vm0, %v2035_v20  ;;  %517 = vperm.xlu0 %1550, %v2035_v20  }
 0x1c9   :  { %502 = vperm.xlu1 %1551, %v1989_v58  }
 0x1ca   :  { %527 = vperm.xlu0 %1550, %v2015_v29  }
 0x1cd   :  { %512 = vperm.xlu1 %1551, %v2012_v23  }
 0x1d1   :  { %522 = vperm.xlu1 %1551, %v2032_v15  }
 0x227   :  { %v463_v56 = vpop.permute.xlu1 %462 }
 0x228   :  { %v453_v3 = vpop.permute.xlu0 %452  ;;  %v532_v12 = vsub.f32 %v1788_v19, %v463_v56 }
 0x229   :  { %v530_v38 = vsub.f32 %v1791_v21, %v453_v3 }
 0x22a   :  { %v550_v35 = vmul.f32 1.442695, %v532_v12 }
 0x22b   :  { %v546_v52 = vmul.f32 1.442695, %v530_v38  ;;  %v468_v7 = vpop.permute.xlu1 %467 }
 0x22c   :  { %v533_v53 = vsub.f32 %v1796_v24, %v468_v7 }
 0x22d   :  { %1584 = vpow2.f32 %v546_v52 }
 0x22e   :  { %v552_v47 = vmul.f32 1.442695, %v533_v53 }
 0x22f   :  { %v458_v18 = vpop.permute.xlu1 %457 }
 0x230   :  { %1586 = vpow2.f32 %v552_v47  ;;  %v531_v31 = vsub.f32 %v1799_v25, %v458_v18 }
 0x232   :  { %v548_v16 = vmul.f32 1.442695, %v531_v31 }
 0x234   :  { %1588 = vpow2.f32 %v548_v16  ;;  %v483_v5 = vpop.permute.xlu1 %482 }
 0x235   :  { %1590 = vpow2.f32 %v550_v35  ;;  %v536_v21 = vsub.f32 %v1812_v32, %v483_v5 }
 0x237   :  { %v1585_v61 = vpop.eup %1584  ;;  %v558_v52 = vmul.f32 1.442695, %v536_v21 }
 0x238   :  { %v473_v38 = vpop.permute.xlu1 %472  ;;  %610 = vadd.xlane.f32.xlu1 %v1585_v61 }
 0x239   :  { %v534_v24 = vsub.f32 %v1804_v28, %v473_v38 }
 0x23a   :  { %v1587_v7 = vpop.eup %1586 }
 0x23b   :  { %v554_v19 = vmul.f32 1.442695, %v534_v24 }
 0x23c   :  { %v478_v53 = vpop.permute.xlu1 %477  ;;  %616 = vadd.xlane.f32.xlu1 %v1587_v7 }
 0x23d   :  { %1592 = vpow2.f32 %v554_v19  ;;  %v535_v25 = vsub.f32 %v1815_v33, %v478_v53  ;;  %v498_v18 = vpop.permute.xlu0 %497 }
 0x23e   :  { %v1589_v31 = vpop.eup %1588  ;;  %1594 = vpow2.f32 %v558_v52  ;;  %v539_v32 = vsub.f32 %v1831_v42, %v498_v18 }
 0x23f   :  { %v1591_v16 = vpop.eup %1590  ;;  %v556_v47 = vmul.f32 1.442695, %v535_v25  ;;  %612 = vadd.xlane.f32.xlu0 %v1589_v31  ;;  %v787_v35 = vpack.c.bf16 %v1589_v31, %v1585_v61 }
 0x240   :  { %v488_v5 = vpop.permute.xlu1 %487  ;;  %v788_v12 = vpack.c.bf16 %v1587_v7, %v1591_v16  ;;  %v564_v33 = vmul.f32 1.442695, %v539_v32 }
 0x241   :  { %1596 = vpow2.f32 %v556_v47  ;;  %v537_v28 = vsub.f32 %v1807_v30, %v488_v5  ;;  %1499 = vmatprep.mubr.bf16.mxu1 %v787_v35  ;;  %v508_v56 = vpop.permute.xlu0 %507 }
 0x242   :  { %1500 = vmatmul.mubr.bf16.vlgmr.msra.gmra.mrb[0].mxu1 %v788_v12  ;;  %v541_v21 = vsub.f32 %v1823_v39, %v508_v56 }
 0x243   :  { %v560_v3 = vmul.f32 1.442695, %v537_v28  ;;  %614 = vadd.xlane.f32.xlu0 %v1591_v16 }
 0x244   :  { %v493_v38 = vpop.permute.xlu1 %492  ;;  %v568_v7 = vmul.f32 1.442695, %v541_v21 }
 0x245   :  { %1598 = vpow2.f32 %v560_v3  ;;  %v538_v61 = vsub.f32 %v1820_v36, %v493_v38  ;;  %v518_v24 = vpop.permute.xlu0 %517 }
 0x246   :  { %1600 = vpow2.f32 %v564_v33  ;;  %v543_v52 = vsub.f32 %v1863_v51, %v518_v24 }
 0x247   :  { %v1593_v19 = vpop.eup %1592  ;;  %v562_v42 = vmul.f32 1.442695, %v538_v61 }
 0x248   :  { %618 = vadd.xlane.f32.xlu0 %v1593_v19  ;;  %v503_v30 = vpop.permute.xlu1 %502  ;;  %v1595_v18 = vpop.eup %1594  ;;  %v572_v16 = vmul.f32 1.442695, %v543_v52 }
 0x249   :  { %1602 = vpow2.f32 %v562_v42  ;;  %v540_v53 = vsub.f32 %v1826_v41, %v503_v30  ;;  %v528_v25 = vpop.permute.xlu0 %527  ;;  %v420_v30 = vmul.f32 1.442695, %v403_v8 }
 0x24a   :  { %1604 = vpow2.f32 %v568_v7  ;;  %v545_v36 = vsub.f32 %v1855_v48, %v528_v25  ;;  %v2282_v25 = vsub.f32 %v1873_v54, %v1878_v57  ;;  %v2286_v54 = vsub.f32 %v1929_v14, %v1945_v22 }
 0x24b   :  { %v1597_v31 = vpop.eup %1596  ;;  %v566_v39 = vmul.f32 1.442695, %v540_v53  ;;  %v418_v53 = vmul.f32 1.442695, %v402_v0  ;;  %v2287_v0 = vsub.f32 %v1920_v9, %v1926_v13  ;;  %v2290_v13 = vsub.f32 %v1972_v44, %v1989_v58 }
 0x24c   :  { %622 = vadd.xlane.f32.xlu0 %v1595_v18  ;;  %v513_v47 = vpop.permute.xlu1 %512  ;;  %v789_v35 = vpack.c.bf16 %v1597_v31, %v1593_v19  ;;  %v576_v12 = vmul.f32 1.442695, %v545_v36  ;;  %v430_v57 = vmul.f32 1.442695, %v2286_v54  ;;  %v2293_v44 = vsub.f32 %v2024_v46, %v2035_v20 }
 0x24d   :  { %1606 = vpow2.f32 %v566_v39  ;;  %v542_v32 = vsub.f32 %v1836_v45, %v513_v47  ;;  %v438_v22 = vmul.f32 1.442695, %v2290_v13 }
 0x24e   :  { %1503 = vmatprep.mubr.bf16.mxu1 %v789_v35  ;;  %1608 = vpow2.f32 %v572_v16  ;;  %v2284_v16 = vsub.f32 %v1911_v6, %v1923_v11  ;;  %v2288_v6 = vsub.f32 %v1950_v27, %v1967_v40  ;;  %v2289_v11 = vsub.f32 %v1982_v49, %v1992_v63 }
 0x24f   :  { %v1599_v51 = vpop.eup %1598  ;;  %v570_v5 = vmul.f32 1.442695, %v542_v32  ;;  %v440_v27 = vmul.f32 1.442695, %v2291_v26  ;;  %v2292_v49 = vsub.f32 %v1994_v1, %v2012_v23  ;;  %v444_v58 = vmul.f32 1.442695, %v2293_v44 }
 0x250   :  { %v523_v41 = vpop.permute.xlu1 %522  ;;  %624 = vadd.xlane.f32.xlu1 %v1599_v51  ;;  %v790_v28 = vpack.c.bf16 %v1599_v51, %v1595_v18  ;;  %v1601_v3 = vpop.eup %1600  ;;  %v422_v18 = vmul.f32 1.442695, %v2282_v25  ;;  %v426_v62 = vmul.f32 1.442695, %v2284_v16  ;;  %v434_v8 = vmul.f32 1.442695, %v2288_v6 }
 0x251   :  { %1610 = vpow2.f32 %v570_v5  ;;  %v544_v56 = vsub.f32 %v1858_v50, %v523_v41  ;;  %v436_v14 = vmul.f32 1.442695, %v2289_v11  ;;  %v442_v63 = vmul.f32 1.442695, %v2292_v49  ;;  %v1576_v32 = vld [vmem:[%s2279_s3] sm:$0xff]   ;;  %v1577_v51 = vld [vmem:[%s2279_s3 + $0x8] sm:$0xff]  }
 0x252   :  { %1504 = vmatmul.mubr.bf16.gmra.mrb[4].mxu1 %v790_v28  ;;  %1612 = vpow2.f32 %v576_v12  ;;  %1515 = vmatprep.subr.bf16.mxu1 %v1576_v32  ;;  %v1578_v5 = vld [vmem:[%s2279_s3 + $0x10] sm:$0xff]   ;;  %v578_v12 = vld [vmem:[#allocation3] sm:$0xff]  ;;  %v1579_v41 = vld [vmem:[%s2279_s3 + $0x18] sm:$0xff]  }
 0x253   :  { %v1603_v48 = vpop.eup %1602  ;;  %v574_v33 = vmul.f32 1.442695, %v544_v56  ;;  %1516 = vmatpush3.bf16.msra.mxu1 %v1576_v32  ;;  %v1581_v44 = vld [vmem:[%s2279_s3 + $0x28] sm:$0xff]  }
 0x254   :  { %626 = vadd.xlane.f32.xlu0 %v1603_v48  ;;  %620 = vadd.xlane.f32.xlu1 %v1597_v31  ;;  %v791_v21 = vpack.c.bf16 %v1601_v3, %v1603_v48  ;;  %v1605_v45 = vpop.eup %1604  ;;  %v2283_v31 = vsub.f32 %v1883_v60, %v1901_v2  ;;  %v432_v60 = vmul.f32 1.442695, %v2287_v0  ;;  %v2295_v0 = vsub.f32 %v2017_v37, %v2032_v15  ;;  %v1580_v37 = vld [vmem:[%s2279_s3 + $0x20] sm:$0xff]  }
 0x255   :  { %1614 = vpow2.f32 %v574_v33  ;;  %1517 = vmatprep.subr.bf16.mxu1 %v1577_v51 }
 0x256   :  { %1507 = vmatprep.mubr.bf16.mxu1 %v791_v21  ;;  %1616 = vpow2.f32 %v420_v30  ;;  %v424_v39 = vmul.f32 1.442695, %v2283_v31  ;;  %v579_v21 = vld [vmem:[#allocation3 + $0x8] sm:$0xff]  ;;  %v582_v30 = vld [vmem:[#allocation3 + $0x20] sm:$0xff]  ;;  %v584_v31 = vld [vmem:[#allocation3 + $0x30] sm:$0xff] }
 0x257   :  { %v1607_v38 = vpop.eup %1606  ;;  %1618 = vpow2.f32 %v418_v53  ;;  %1518 = vmatpush3.bf16.msra.mxu1 %v1577_v51 }
 0x258   :  { %630 = vadd.xlane.f32.xlu0 %v1607_v38  ;;  %632 = vadd.xlane.f32.xlu1 %v1605_v45  ;;  %v792_v61 = vpack.c.bf16 %v1605_v45, %v1607_v38  ;;  %v1609_v24 = vpop.eup %1608  ;;  %1620 = vpow2.f32 %v422_v18 }
 0x259   :  { %1622 = vpow2.f32 %v424_v39  ;;  %1519 = vmatprep.subr.bf16.mxu1 %v1578_v5 }
 0x25a   :  { %1508 = vmatmul.mubr.bf16.gmra.mrb[8].mxu1 %v792_v61  ;;  %1624 = vpow2.f32 %v426_v62 }
 0x25b   :  { %v1611_v19 = vpop.eup %1610  ;;  %1626 = vpow2.f32 %v428_v59  ;;  %1520 = vmatpush3.bf16.msra.mxu1 %v1578_v5  ;;  %v448_v59 = vmul.f32 1.442695, %v2294_v55  ;;  %v587_v5 = vld [vmem:[#allocation3 + $0x48] sm:$0xff] }
 0x25c   :  { %634 = vadd.xlane.f32.xlu0 %v1611_v19  ;;  %628 = vadd.xlane.f32.xlu1 %v1601_v3  ;;  %v793_v50 = vpack.c.bf16 %v1609_v24, %v1611_v19  ;;  %v1613_v42 = vpop.eup %1612  ;;  %1628 = vpow2.f32 %v430_v57  ;;  %v581_v3 = vld [vmem:[#allocation3 + $0x18] sm:$0xff]  ;;  %v580_v19 = vld [vmem:[#allocation3 + $0x10] sm:$0xff] }
 0x25d   :  { %1630 = vpow2.f32 %v432_v60  ;;  %1521 = vmatprep.subr.bf16.mxu1 %v1579_v41  ;;  %v585_v57 = vld [vmem:[#allocation3 + $0x38] sm:$0xff]  ;;  %v446_v60 = vmul.f32 1.442695, %v2295_v0 }
 0x25e   :  { %1511 = vmatprep.mubr.bf16.mxu1 %v793_v50  ;;  %1632 = vpow2.f32 %v434_v8 }
 0x25f   :  { %v1615_v7 = vpop.eup %1614  ;;  %1634 = vpow2.f32 %v436_v14  ;;  %1522 = vmatpush3.bf16.msra.mxu1 %v1579_v41  ;;  %v583_v14 = vld [vmem:[#allocation3 + $0x28] sm:$0xff] }
 0x260   :  { %638 = vadd.xlane.f32.xlu0 %v1615_v7  ;;  %640 = vadd.xlane.f32.xlu1 %v1613_v42  ;;  %v794_v52 = vpack.c.bf16 %v1613_v42, %v1615_v7  ;;  %v2091_v2 = vpop.eup %1616  ;;  %1636 = vpow2.f32 %v438_v22 }
 0x261   :  { %v1619_v4 = vpop.eup %1618  ;;  %1638 = vpow2.f32 %v440_v27  ;;  %v595_v61 = vmul.f32 %v2091_v2, %v579_v21  ;;  %1523 = vmatprep.subr.bf16.mxu1 %v1580_v37  ;;  %v589_v27 = vld [vmem:[#allocation3 + $0x58] sm:$0xff] }
 0x262   :  { %1512 = vmatmul.mubr.bf16.gmra.mrb[12].mxu1 %v794_v52  ;;  %v2100_v17 = vpop.eup %1620  ;;  %1640 = vpow2.f32 %v442_v63  ;;  %v594_v28 = vmul.f32 %v1619_v4, %v578_v12  ;;  %v590_v12 = vld [vmem:[#allocation3 + $0x60] sm:$0xff] }
 0x263   :  { %v1623_v9 = vpop.eup %1622  ;;  %1642 = vpow2.f32 %v444_v58  ;;  %v596_v42 = vmul.f32 %v2100_v17, %v580_v19  ;;  %1524 = vmatpush3.bf16.msra.mxu1 %v1580_v37 }
 0x264   :  { %636 = vadd.xlane.f32.xlu1 %v1609_v24  ;;  %v1625_v40 = vpop.eup %1624  ;;  %v597_v33 = vmul.f32 %v1623_v9, %v581_v3  ;;  %1525 = vmatprep.subr.bf16.mxu1 %v1581_v44 }
 0x265   :  { %v2109_v36 = vpop.eup %1626  ;;  %v598_v25 = vmul.f32 %v1625_v40, %v582_v30 }
 0x266   :  { %v1629_v47 = vpop.eup %1628  ;;  %v599_v15 = vmul.f32 %v2109_v36, %v583_v14 }
 0x267   :  { %v2118_v34 = vpop.eup %1630  ;;  %v600_v62 = vmul.f32 %v1629_v47, %v584_v31  ;;  %1526 = vmatpush3.bf16.msra.mxu1 %v1581_v44 }
 0x268   :  { %v2121_v43 = vpop.eup %1632  ;;  %v601_v6 = vmul.f32 %v2118_v34, %v585_v57 }
 0x269   :  { %v2123_v35 = vpop.eup %1634 }
 0x26a   :  { %v2127_v1 = vpop.eup %1636 }
 0x26b   :  { %v2129_v23 = vpop.eup %1638 }
 0x26c   :  { %v2133_v46 = vpop.eup %1640 }
 0x26d   :  { %v2135_v20 = vpop.eup %1642 }
 0x275   :  { %698 = vperm.xlu1 %1551, %v2091_v2  }
 0x276   :  { %693 = vperm.xlu0 %1550, %v1619_v4  }
 0x279   :  { %703 = vperm.xlu1 %1551, %v2100_v17   ;;  %v586_v17 = vld [vmem:[#allocation3 + $0x40] sm:$0xff] }
 0x27a   :  { %708 = vperm.xlu0 %1550, %v1623_v9   ;;  %v602_v9 = vmul.f32 %v2121_v43, %v586_v17 }
 0x27d   :  { %713 = vperm.xlu1 %1551, %v1625_v40   ;;  %v588_v40 = vld [vmem:[#allocation3 + $0x50] sm:$0xff] }
 0x27e   :  { %718 = vperm.xlu0 %1550, %v2109_v36   ;;  %v605_v36 = vmul.f32 %v2129_v23, %v589_v27 }
 0x281   :  { %723 = vperm.xlu1 %1551, %v1629_v47   ;;  %v604_v47 = vmul.f32 %v2127_v1, %v588_v40 }
 0x282   :  { %728 = vperm.xlu0 %1550, %v2118_v34  }
 0x285   :  { %733 = vperm.xlu1 %1551, %v2121_v43  }
 0x286   :  { %738 = vperm.xlu0 %1550, %v2123_v35  }
 0x289   :  { %743 = vperm.xlu1 %1551, %v2127_v1  }
 0x28a   :  { %748 = vperm.xlu0 %1550, %v2129_v23  }
 0x28d   :  { %753 = vperm.xlu1 %1551, %v2133_v46  }
 0x28e   :  { %758 = vperm.xlu0 %1550, %v2135_v20  }
 0x2c5   :  { %v611_v56 = vpop.xlane.xlu1 %610 }
 0x2c6   :  { %v642_v48 = vadd.f32 %v611_v56, %v594_v28  ;;  %v1582_v56 = vld [vmem:[%s2279_s3 + $0x30] sm:$0xff]  }
 0x2c7   :  { %1527 = vmatprep.subr.bf16.mxu1 %v1582_v56 }
 0x2c8   :  { %659 = vst.msk [vmem:[#allocation3] sm:$0xff] %vm34_vm0, %v642_v48  ;;  %v603_v48 = vmul.f32 %v2123_v35, %v587_v5  ;;  %1528 = vmatpush3.bf16.msra.mxu1 %v1582_v56 }
 0x2c9   :  { %v617_v45 = vpop.xlane.xlu1 %616 }
 0x2ca   :  { %v645_v38 = vadd.f32 %v617_v45, %v597_v33  ;;  %v606_v33 = vmul.f32 %v2133_v46, %v590_v12 }
 0x2cc   :  { %662 = vst.msk [vmem:[#allocation3 + $0x18] sm:$0xff] %vm34_vm0, %v645_v38  ;;  %v613_v24 = vpop.xlane.xlu0 %612 }
 0x2cd   :  { %v643_v50 = vadd.f32 %v613_v24, %v595_v61  ;;  %v593_v61 = vld [vmem:[#allocation3 + $0x78] sm:$0xff]  ;;  %v592_v24 = vld [vmem:[#allocation3 + $0x70] sm:$0xff] }
 0x2cf   :  { %660 = vst.msk [vmem:[#allocation3 + $0x8] sm:$0xff] %vm34_vm0, %v643_v50  ;;  %v1007_v8 = vld [vmem:[#allocation3] sm:$0xff] }
 0x2d0   :  { %v615_v7 = vpop.xlane.xlu0 %614 }
 0x2d1   :  { %v644_v52 = vadd.f32 %v615_v7, %v596_v42  ;;  %v1583_v42 = vld [vmem:[%s2279_s3 + $0x38] sm:$0xff]  }
 0x2d2   :  { %1529 = vmatprep.subr.bf16.mxu1 %v1583_v42 }
 0x2d3   :  { %661 = vst.msk [vmem:[#allocation3 + $0x10] sm:$0xff] %vm34_vm0, %v644_v52  ;;  %v1010_v53 = vld [vmem:[#allocation3 + $0x18] sm:$0xff]  ;;  %1530 = vmatpush3.bf16.msra.mxu1 %v1583_v42 }
 0x2d4   :  { %1644 = vrcp.f32 %v1010_v53  ;;  %v591_v53 = vld [vmem:[#allocation3 + $0x68] sm:$0xff] }
 0x2d5   :  { %v619_v18 = vpop.xlane.xlu0 %618 }
 0x2d6   :  { %v646_v39 = vadd.f32 %v619_v18, %v598_v25  ;;  %v1008_v16 = vld [vmem:[#allocation3 + $0x8] sm:$0xff] }
 0x2d7   :  { %1646 = vrcp.f32 %v1008_v16 }
 0x2d8   :  { %663 = vst.msk [vmem:[#allocation3 + $0x20] sm:$0xff] %vm34_vm0, %v646_v39 }
 0x2d9   :  { %v623_v54 = vpop.xlane.xlu0 %622 }
 0x2da   :  { %v648_v2 = vadd.f32 %v623_v54, %v600_v62  ;;  %v1009_v4 = vld [vmem:[#allocation3 + $0x10] sm:$0xff]  ;;  %v607_v62 = vmul.f32 %v2135_v20, %v591_v53 }
 0x2db   :  { %1648 = vrcp.f32 %v1009_v4 }
 0x2dc   :  { %665 = vst.msk [vmem:[#allocation3 + $0x30] sm:$0xff] %vm34_vm0, %v648_v2  ;;  %1650 = vpow2.f32 %v448_v59 }
 0x2dd   :  { %v625_v11 = vpop.xlane.xlu1 %624  ;;  %1652 = vpow2.f32 %v446_v60 }
 0x2de   :  { %v1645_v10 = vpop.eup %1644  ;;  %v649_v29 = vadd.f32 %v625_v11, %v601_v6  ;;  %1654 = vrcp.f32 %v1007_v8 }
 0x2df   :  { %1056 = vperm.xlu0 %1550, %v1645_v10   ;;  %v1011_v34 = vld [vmem:[#allocation3 + $0x20] sm:$0xff] }
 0x2e0   :  { %666 = vst.msk [vmem:[#allocation3 + $0x38] sm:$0xff] %vm34_vm0, %v649_v29 }
 0x2e1   :  { %v1647_v13 = vpop.eup %1646  ;;  %v621_v22 = vpop.xlane.xlu1 %620 }
 0x2e2   :  { %v627_v26 = vpop.xlane.xlu0 %626  ;;  %v647_v49 = vadd.f32 %v621_v22, %v599_v15 }
 0x2e3   :  { %v650_v63 = vadd.f32 %v627_v26, %v602_v9  ;;  %1046 = vperm.xlu0 %1550, %v1647_v13   ;;  %v1013_v58 = vld [vmem:[#allocation3 + $0x30] sm:$0xff] }
 0x2e4   :  { %664 = vst.msk [vmem:[#allocation3 + $0x28] sm:$0xff] %vm34_vm0, %v647_v49  ;;  %1656 = vrcp.f32 %v1013_v58 }
 0x2e5   :  { %667 = vst.msk [vmem:[#allocation3 + $0x40] sm:$0xff] %vm34_vm0, %v650_v63  ;;  %v1649_v43 = vpop.eup %1648  ;;  %v633_v32 = vpop.xlane.xlu1 %632  ;;  %1658 = vrcp.f32 %v1011_v34 }
 0x2e6   :  { %v631_v51 = vpop.xlane.xlu0 %630  ;;  %v653_v41 = vadd.f32 %v633_v32, %v605_v36  ;;  %1051 = vperm.xlu1 %1551, %v1649_v43   ;;  %v2182_v3 = vpop.eup %1650 }
 0x2e7   :  { %v652_v28 = vadd.f32 %v631_v51, %v604_v47  ;;  %v1014_v23 = vld [vmem:[#allocation3 + $0x38] sm:$0xff]  ;;  %v2184_v1 = vpop.eup %1652  ;;  %v609_v35 = vmul.f32 %v2182_v3, %v593_v61 }
 0x2e8   :  { %670 = vst.msk [vmem:[#allocation3 + $0x58] sm:$0xff] %vm34_vm0, %v653_v41  ;;  %1660 = vrcp.f32 %v1014_v23  ;;  %v1655_v21 = vpop.eup %1654  ;;  %v608_v46 = vmul.f32 %v2184_v1, %v592_v24 }
 0x2e9   :  { %669 = vst.msk [vmem:[#allocation3 + $0x50] sm:$0xff] %vm34_vm0, %v652_v28  ;;  %v629_v45 = vpop.xlane.xlu1 %628 }
 0x2ea   :  { %v635_v38 = vpop.xlane.xlu0 %634  ;;  %v651_v19 = vadd.f32 %v629_v45, %v603_v48  ;;  %1041 = vperm.xlu1 %1551, %v1655_v21  }
 0x2eb   :  { %v654_v50 = vadd.f32 %v635_v38, %v606_v33  ;;  %v1012_v7 = vld [vmem:[#allocation3 + $0x28] sm:$0xff] }
 0x2ec   :  { %668 = vst.msk [vmem:[#allocation3 + $0x48] sm:$0xff] %vm34_vm0, %v651_v19  ;;  %1662 = vrcp.f32 %v1012_v7  ;;  %v1015_v0 = vld [vmem:[#allocation3 + $0x40] sm:$0xff] }
 0x2ed   :  { %671 = vst.msk [vmem:[#allocation3 + $0x60] sm:$0xff] %vm34_vm0, %v654_v50  ;;  %v641_v52 = vpop.xlane.xlu1 %640 }
 0x2ee   :  { %v639_v30 = vpop.xlane.xlu0 %638  ;;  %v1657_v25 = vpop.eup %1656  ;;  %v657_v18 = vadd.f32 %v641_v52, %v609_v35 }
 0x2ef   :  { %v656_v31 = vadd.f32 %v639_v30, %v608_v46  ;;  %1071 = vperm.xlu1 %1551, %v1657_v25   ;;  %v1018_v39 = vld [vmem:[#allocation3 + $0x58] sm:$0xff]  ;;  %v1659_v55 = vpop.eup %1658 }
 0x2f0   :  { %v1017_v16 = vld [vmem:[#allocation3 + $0x50] sm:$0xff]  ;;  %674 = vst.msk [vmem:[#allocation3 + $0x78] sm:$0xff] %vm34_vm0, %v657_v18  ;;  %1664 = vrcp.f32 %v1018_v39 }
 0x2f1   :  { %673 = vst.msk [vmem:[#allocation3 + $0x70] sm:$0xff] %vm34_vm0, %v656_v31  ;;  %v637_v59 = vpop.xlane.xlu1 %636  ;;  %1666 = vrcp.f32 %v1017_v16 }
 0x2f2   :  { %v1661_v54 = vpop.eup %1660  ;;  %v655_v57 = vadd.f32 %v637_v59, %v607_v62 }
 0x2f3   :  { %1076 = vperm.xlu0 %1550, %v1661_v54   ;;  %1061 = vperm.xlu1 %1551, %v1659_v55   ;;  %v1016_v60 = vld [vmem:[#allocation3 + $0x48] sm:$0xff] }
 0x2f4   :  { %672 = vst.msk [vmem:[#allocation3 + $0x68] sm:$0xff] %vm34_vm0, %v655_v57  ;;  %1668 = vrcp.f32 %v1016_v60  ;;  %v1019_v6 = vld [vmem:[#allocation3 + $0x60] sm:$0xff] }
 0x2f5   :  { %1670 = vrcp.f32 %v1015_v0  ;;  %v694_v12 = vpop.permute.xlu0 %693  ;;  %v699_v41 = vpop.permute.xlu1 %698 }
 0x2f6   :  { %v1663_v2 = vpop.eup %1662  ;;  %v772_v52 = vmul.f32 0.0, %v699_v41  ;;  %v771_v30 = vmul.f32 0.0, %v694_v12 }
 0x2f7   :  { %1066 = vperm.xlu0 %1550, %v1663_v2   ;;  %v1022_v11 = vld [vmem:[#allocation3 + $0x78] sm:$0xff] }
 0x2f8   :  { %v1021_v17 = vld [vmem:[#allocation3 + $0x70] sm:$0xff] }
 0x2f9   :  { %v709_v28 = vpop.permute.xlu0 %708  ;;  %v704_v56 = vpop.permute.xlu1 %703 }
 0x2fa   :  { %v1665_v4 = vpop.eup %1664  ;;  %v773_v50 = vmul.f32 0.0, %v704_v56  ;;  %v774_v42 = vmul.f32 0.0, %v709_v28 }
 0x2fb   :  { %v1667_v8 = vpop.eup %1666  ;;  %1096 = vperm.xlu0 %1550, %v1665_v4   ;;  %v1020_v20 = vld [vmem:[#allocation3 + $0x68] sm:$0xff] }
 0x2fc   :  { %1091 = vperm.xlu1 %1551, %v1667_v8   ;;  %1672 = vrcp.f32 %v1020_v20 }
 0x2fd   :  { %1674 = vrcp.f32 %v1019_v6  ;;  %v714_v23 = vpop.permute.xlu1 %713 }
 0x2fe   :  { %v1669_v14 = vpop.eup %1668  ;;  %1676 = vrcp.f32 %v1022_v11  ;;  %v775_v8 = vmul.f32 0.0, %v714_v23 }
 0x2ff   :  { %v1671_v10 = vpop.eup %1670  ;;  %1086 = vperm.xlu0 %1550, %v1669_v14   ;;  %1678 = vrcp.f32 %v1021_v17 }
 0x300   :  { %1081 = vperm.xlu1 %1551, %v1671_v10  }
 0x301   :  { %v724_v48 = vpop.permute.xlu1 %723 }
 0x302   :  { %v777_v0 = vmul.f32 0.0, %v724_v48 }
 0x303   :  { %768 = vperm.xlu0 %1550, %v2182_v3   ;;  %v719_v3 = vpop.permute.xlu0 %718 }
 0x304   :  { %763 = vperm.xlu1 %1551, %v2184_v1   ;;  %v776_v20 = vmul.f32 0.0, %v719_v3 }
 0x305   :  { %v734_v21 = vpop.permute.xlu1 %733 }
 0x306   :  { %v1673_v29 = vpop.eup %1672  ;;  %v779_v3 = vmul.f32 0.0, %v734_v21 }
 0x307   :  { %v1675_v37 = vpop.eup %1674  ;;  %1106 = vperm.xlu0 %1550, %v1673_v29   ;;  %v729_v1 = vpop.permute.xlu0 %728 }
 0x308   :  { %1101 = vperm.xlu1 %1551, %v1675_v37   ;;  %v1677_v15 = vpop.eup %1676  ;;  %v778_v60 = vmul.f32 0.0, %v729_v1 }
 0x309   :  { %v1679_v9 = vpop.eup %1678  ;;  %v744_v38 = vpop.permute.xlu1 %743 }
 0x30b   :  { %1116 = vperm.xlu0 %1550, %v1677_v15   ;;  %v739_v33 = vpop.permute.xlu0 %738 }
 0x30c   :  { %1111 = vperm.xlu1 %1551, %v1679_v9  }
 0x30d   :  { %v754_v24 = vpop.permute.xlu1 %753 }
 0x30f   :  { %v749_v45 = vpop.permute.xlu0 %748 }
 0x310   :  { %v782_v9 = vmul.f32 0.0, %v749_v45 }
 0x313   :  { %v759_v61 = vpop.permute.xlu0 %758 }
 0x315   :  { %v1501_v13 = vpop.f32.mrb[0].mxu1 }
 0x316   :  { %v877_v22 = vpop.f32.mrb[1].mxu1  ;;  %v942_v7 = vadd.f32 %v1501_v13, %v773_v50 }
 0x317   :  { %v1502_v26 = vpop.f32.mrb[2].mxu1  ;;  %v940_v31 = vadd.f32 %v877_v22, %v771_v30 }
 0x318   :  { %v880_v27 = vpop.f32.mrb[3].mxu1  ;;  %v943_v35 = vadd.f32 %v1502_v26, %v774_v42  ;;  %v781_v26 = vmul.f32 0.0, %v744_v38 }
 0x319   :  { %v941_v39 = vadd.f32 %v880_v27, %v772_v52 }
 0x325   :  { %v1505_v40 = vpop.f32.mrb[4].mxu1 }
 0x326   :  { %v893_v49 = vpop.f32.mrb[5].mxu1  ;;  %v946_v2 = vadd.f32 %v1505_v40, %v777_v0 }
 0x327   :  { %v1506_v63 = vpop.f32.mrb[6].mxu1  ;;  %v944_v10 = vadd.f32 %v893_v49, %v775_v8 }
 0x328   :  { %v896_v44 = vpop.f32.mrb[7].mxu1  ;;  %v947_v4 = vadd.f32 %v1506_v63, %v778_v60  ;;  %v780_v63 = vmul.f32 0.0, %v739_v33  ;;  %v783_v33 = vmul.f32 0.0, %v754_v24 }
 0x329   :  { %v945_v29 = vadd.f32 %v896_v44, %v776_v20 }
 0x32d   :  { %v2203_v58 = vpop.f32.mrb[8].mxu1 }
 0x32e   :  { %v2205_v36 = vpop.f32.mrb[9].mxu1  ;;  %v950_v41 = vadd.f32 %v2203_v58, %v781_v26  ;;  %v784_v58 = vmul.f32 0.0, %v759_v61 }
 0x32f   :  { %v1510_v47 = vpop.f32.mrb[10].mxu1  ;;  %v948_v44 = vadd.f32 %v2205_v36, %v779_v3 }
 0x330   :  { %v2207_v34 = vpop.f32.mrb[11].mxu1  ;;  %v951_v27 = vadd.f32 %v1510_v47, %v782_v9 }
 0x331   :  { %v949_v49 = vadd.f32 %v2207_v34, %v780_v63 }
 0x335   :  { %v2209_v43 = vpop.f32.mrb[12].mxu1 }
 0x336   :  { %v2211_v32 = vpop.f32.mrb[13].mxu1 }
 0x337   :  { %v2213_v51 = vpop.f32.mrb[14].mxu1 }
 0x338   :  { %v2215_v5 = vpop.f32.mrb[15].mxu1 }
 0x35e   :  { %v1057_v19 = vpop.permute.xlu0 %1056 }
 0x35f   :  { %v1122_v53 = vmul.f32 %v1057_v19, %v943_v35  ;;  %v952_v35 = vadd.f32 %v2211_v32, %v783_v33  ;;  %v1394_v32 = vld [vmem:[%s2280_s4] ss:$0 sm:$0xff] }
 0x362   :  { %v1047_v18 = vpop.permute.xlu0 %1046 }
 0x363   :  { %v1120_v55 = vmul.f32 %v1047_v18, %v941_v39 }
 0x365   :  { %v1052_v46 = vpop.permute.xlu1 %1051 }
 0x366   :  { %v1121_v25 = vmul.f32 %v1052_v46, %v942_v7  ;;  %v953_v7 = vadd.f32 %v2215_v5, %v784_v58 }
 0x368   :  { %v1136_v16 = vpack.c.bf16 %v1122_v53, %v1121_v25 }
 0x369   :  { %v1042_v62 = vpop.permute.xlu1 %1041 }
 0x36a   :  { %v1119_v59 = vmul.f32 %v1042_v62, %v940_v31 }
 0x36c   :  { %v1135_v54 = vpack.c.bf16 %v1120_v55, %v1119_v59 }
 0x36e   :  { %v1072_v57 = vpop.permute.xlu1 %1071  ;;  %1531 = vmatprep.mubr.bf16.mxu1 %v1135_v54 }
 0x36f   :  { %1532 = vmatmul.mubr.bf16.vlgmr.msra.gmra.mrb[16].mxu1 %v1136_v16  ;;  %v1125_v11 = vmul.f32 %v1072_v57, %v946_v2 }
 0x372   :  { %v1077_v6 = vpop.permute.xlu0 %1076  ;;  %v1062_v17 = vpop.permute.xlu1 %1061 }
 0x373   :  { %v1126_v14 = vmul.f32 %v1077_v6, %v947_v4  ;;  %v1123_v13 = vmul.f32 %v1062_v17, %v944_v10 }
 0x375   :  { %v1138_v37 = vpack.c.bf16 %v1126_v14, %v1125_v11 }
 0x376   :  { %v1067_v15 = vpop.permute.xlu0 %1066 }
 0x377   :  { %v1124_v22 = vmul.f32 %v1067_v15, %v945_v29 }
 0x379   :  { %v1137_v12 = vpack.c.bf16 %v1124_v22, %v1123_v13 }
 0x37a   :  { %v1097_v40 = vpop.permute.xlu0 %1096 }
 0x37b   :  { %v1092_v28 = vpop.permute.xlu1 %1091  ;;  %v1130_v56 = vmul.f32 %v1097_v40, %v951_v27  ;;  %1535 = vmatprep.mubr.bf16.mxu1 %v1137_v12 }
 0x37c   :  { %v1129_v23 = vmul.f32 %v1092_v28, %v950_v41  ;;  %1536 = vmatmul.mubr.bf16.gmra.mrb[20].mxu1 %v1138_v37 }
 0x37e   :  { %v1140_v1 = vpack.c.bf16 %v1130_v56, %v1129_v23  ;;  %v1087_v48 = vpop.permute.xlu0 %1086 }
 0x37f   :  { %v1082_v45 = vpop.permute.xlu1 %1081  ;;  %v1128_v38 = vmul.f32 %v1087_v48, %v949_v49 }
 0x380   :  { %v1127_v47 = vmul.f32 %v1082_v45, %v948_v44 }
 0x382   :  { %v1139_v19 = vpack.c.bf16 %v1128_v38, %v1127_v47  ;;  %v769_v50 = vpop.permute.xlu0 %768 }
 0x383   :  { %v764_v42 = vpop.permute.xlu1 %763  ;;  %v786_v21 = vmul.f32 0.0, %v769_v50 }
 0x384   :  { %1539 = vmatprep.mubr.bf16.mxu1 %v1139_v19  ;;  %v785_v34 = vmul.f32 0.0, %v764_v42 }
 0x385   :  { %1540 = vmatmul.mubr.bf16.gmra.mrb[24].mxu1 %v1140_v1  ;;  %v955_v53 = vadd.f32 %v2213_v51, %v786_v21 }
 0x386   :  { %v1107_v46 = vpop.permute.xlu0 %1106  ;;  %v954_v18 = vadd.f32 %v2209_v43, %v785_v34 }
 0x387   :  { %v1102_v36 = vpop.permute.xlu1 %1101  ;;  %v1132_v52 = vmul.f32 %v1107_v46, %v953_v7 }
 0x388   :  { %v1131_v30 = vmul.f32 %v1102_v36, %v952_v35 }
 0x38a   :  { %v1141_v25 = vpack.c.bf16 %v1132_v52, %v1131_v30  ;;  %v1117_v61 = vpop.permute.xlu0 %1116 }
 0x38b   :  { %v1112_v31 = vpop.permute.xlu1 %1111  ;;  %v1134_v24 = vmul.f32 %v1117_v61, %v955_v53 }
 0x38c   :  { %v1133_v39 = vmul.f32 %v1112_v31, %v954_v18  ;;  %1543 = vmatprep.mubr.bf16.mxu1 %v1141_v25 }
 0x38e   :  { %v1142_v5 = vpack.c.bf16 %v1134_v24, %v1133_v39 }
 0x390   :  { %1544 = vmatmul.mubr.bf16.gmra.mrb[28].mxu1 %v1142_v5 }
 0x442   :  { %v1533_v16 = vpop.f32.mrb[16].mxu1 }
 0x443   :  { %v1257_v62 = vadd.f32 %v1533_v16, %v1394_v32  ;;  %v1248_v55 = vpop.f32.mrb[17].mxu1 }
 0x444   :  { %v1249_v59 = vadd.f32 %v1394_v32, %v1248_v55  ;;  %v1534_v54 = vpop.f32.mrb[18].mxu1 }
 0x445   :  { %1313 = vst [vmem:[%s2281_s6 + $0x10] sm:$0xff] %v1257_v62  ;;  %v1260_v43 = vadd.f32 %v1534_v54, %v1394_v32  ;;  %v1251_v51 = vpop.f32.mrb[19].mxu1 }
 0x446   :  { %1311 = vst [vmem:[%s2281_s6] sm:$0xff] %v1249_v59  ;;  %v1252_v57 = vadd.f32 %v1394_v32, %v1251_v51 }
 0x447   :  { %1314 = vst [vmem:[%s2281_s6 + $0x18] sm:$0xff] %v1260_v43 }
 0x448   :  { %1312 = vst [vmem:[%s2281_s6 + $0x8] sm:$0xff] %v1252_v57 }
 0x44f   :  { %v1537_v0 = vpop.f32.mrb[20].mxu1 }
 0x450   :  { %v1273_v60 = vadd.f32 %v1537_v0, %v1394_v32  ;;  %v1264_v2 = vpop.f32.mrb[21].mxu1 }
 0x451   :  { %v1265_v4 = vadd.f32 %v1394_v32, %v1264_v2  ;;  %v1538_v6 = vpop.f32.mrb[22].mxu1 }
 0x452   :  { %1317 = vst [vmem:[%s2281_s6 + $0x30] sm:$0xff] %v1273_v60  ;;  %v1276_v8 = vadd.f32 %v1538_v6, %v1394_v32  ;;  %v1267_v20 = vpop.f32.mrb[23].mxu1 }
 0x453   :  { %1315 = vst [vmem:[%s2281_s6 + $0x20] sm:$0xff] %v1265_v4  ;;  %v1268_v11 = vadd.f32 %v1394_v32, %v1267_v20 }
 0x454   :  { %1318 = vst [vmem:[%s2281_s6 + $0x38] sm:$0xff] %v1276_v8 }
 0x455   :  { %1316 = vst [vmem:[%s2281_s6 + $0x28] sm:$0xff] %v1268_v11 }
 0x458   :  { %v1541_v14 = vpop.f32.mrb[24].mxu1 }
 0x459   :  { %v1289_v17 = vadd.f32 %v1541_v14, %v1394_v32  ;;  %v1280_v10 = vpop.f32.mrb[25].mxu1 }
 0x45a   :  { %v1281_v29 = vadd.f32 %v1394_v32, %v1280_v10  ;;  %v1542_v37 = vpop.f32.mrb[26].mxu1 }
 0x45b   :  { %1321 = vst [vmem:[%s2281_s6 + $0x50] sm:$0xff] %v1289_v17  ;;  %v1292_v15 = vadd.f32 %v1542_v37, %v1394_v32  ;;  %v1283_v9 = vpop.f32.mrb[27].mxu1 }
 0x45c   :  { %1319 = vst [vmem:[%s2281_s6 + $0x40] sm:$0xff] %v1281_v29  ;;  %v1284_v13 = vadd.f32 %v1394_v32, %v1283_v9 }
 0x45d   :  { %1322 = vst [vmem:[%s2281_s6 + $0x58] sm:$0xff] %v1292_v15 }
 0x45e   :  { %1320 = vst [vmem:[%s2281_s6 + $0x48] sm:$0xff] %v1284_v13 }
 0x463   :  { %v1545_v22 = vpop.f32.mrb[28].mxu1 }
 0x464   :  { %v1305_v26 = vadd.f32 %v1545_v22, %v1394_v32  ;;  %v1296_v27 = vpop.f32.mrb[29].mxu1 }
 0x465   :  { %v1297_v12 = vadd.f32 %v1394_v32, %v1296_v27  ;;  %v1546_v41 = vpop.f32.mrb[30].mxu1 }
 0x466   :  { %1325 = vst [vmem:[%s2281_s6 + $0x70] sm:$0xff] %v1305_v26  ;;  %v1308_v40 = vadd.f32 %v1546_v41, %v1394_v32  ;;  %v1299_v63 = vpop.f32.mrb[31].mxu1 }
 0x467   :  { %1323 = vst [vmem:[%s2281_s6 + $0x60] sm:$0xff] %v1297_v12  ;;  %v1300_v28 = vadd.f32 %v1394_v32, %v1299_v63 }
 0x468   :  { %1326 = vst [vmem:[%s2281_s6 + $0x78] sm:$0xff] %v1308_v40 }
 0x469   :  { %1324 = vst [vmem:[%s2281_s6 + $0x68] sm:$0xff] %v1300_v28 }

</bundles_post_ra>
